<compile_context>
chip_gen: v7x
topology: tpu7x:2x2x1
jax: 0.10.0
libtpu: 0.0.40
codegen_flags: <defaults>
</compile_context>

<pallas_src>
import functools
import numpy as np
import jax
import jax.numpy as jnp
from jax import lax
from jax.experimental import pallas as pl
from jax.experimental.pallas import tpu as pltpu

_SQRT_HALF = 0.7071067811865476


def _rup8(n):
    return (n + 7) // 8 * 8


# ----------------------------- in-kernel math --------------------------------

def _erf_approx(x):
    # Abramowitz & Stegun 7.1.26 rational approximation, |err| < 1.5e-7.
    # Reproduces the exact (erf-based) torch.nn.GELU to float32 precision.
    p = 0.3275911
    a1, a2, a3, a4, a5 = 0.254829592, -0.284496736, 1.421413741, -1.453152027, 1.061405429
    s = jnp.where(x < 0.0, -1.0, 1.0)
    ax = jnp.abs(x)
    t = 1.0 / (1.0 + p * ax)
    poly = ((((a5 * t + a4) * t + a3) * t + a2) * t + a1) * t
    return s * (1.0 - poly * jnp.exp(-ax * ax))


def _gelu(x):
    return 0.5 * x * (1.0 + _erf_approx(x * _SQRT_HALF))


def _groupnorm1(x, gamma, beta, eps=1e-5):
    # GroupNorm(num_groups=1): stats over the whole (C, HW) sample.
    # Single fused pass: sum and sum-of-squares together.
    n = x.shape[0] * x.shape[1]
    s1 = jnp.sum(x)
    s2 = jnp.sum(x * x)
    mean = s1 / n
    var = jnp.maximum(s2 / n - mean * mean, 0.0)
    return (x - mean) * lax.rsqrt(var + eps) * gamma + beta


def _shift_lanes(x, s):
    # y[:, p] = x[:, p + s] for in-range p; wrapped positions are masked by the
    # caller. Implemented with explicit slices+concat (guaranteed semantics &
    # Mosaic lowering); small tiles so the lane shuffle is cheap.
    n = x.shape[1]
    s = s % n
    if s == 0:
        return x
    return jnp.concatenate([x[:, s:], x[:, :s]], axis=1)


# --------------------------------- kernel -------------------------------------

def _down_kernel(W, W2, H2, cp_in, cp_out,
                 x_ref, emb_ref, sel_ref, mask_ref,
                 w1a_ref, g1a_ref, b1a_ref, w1b_ref, g1b_ref, b1b_ref,
                 w2a_ref, g2a_ref, b2a_ref, w2b_ref, g2b_ref, b2b_ref,
                 out_ref, col_ref):
    hw2 = H2 * W2

    def conv3x3(xin, w_ref, cp):
        # zero-padded 3x3 "same" conv as ONE im2col matmul:
        #   col[tap*cp + c, q] = xin[c, q + (dy-1)*W2 + (dx-1)]  (masked at halo)
        #   out = W(cout, 9*cp) @ col(9*cp, hw2)
        c = xin.shape[0]
        zpad = jnp.zeros((cp - c, hw2), jnp.float32) if cp > c else None
        for dy in range(3):
            for dx in range(3):
                tap = dy * 3 + dx
                s = (dy - 1) * W2 + (dx - 1)
                piece = _shift_lanes(xin, s) * mask_ref[tap:tap + 1, :]
                if zpad is not None:           # keep 8-sublane-aligned full stores
                    piece = jnp.concatenate([piece, zpad], axis=0)
                col_ref[tap * cp:(tap + 1) * cp, :] = piece
        return jnp.dot(w_ref[...], col_ref[:9 * cp, :],
                       preferred_element_type=jnp.float32)

    # --- MaxPool2d(2): neighbour maxes via lane shifts + 0/1 selection matmul ---
    xf = x_ref[0].astype(jnp.float32)                          # (Cin, H*W)
    m = jnp.maximum(xf, _shift_lanes(xf, 1))                   # pair along W
    m = jnp.maximum(m, _shift_lanes(m, W))                     # pair along H
    x0 = jnp.dot(m, sel_ref[...], preferred_element_type=jnp.float32)  # (Cin, H2*W2)

    # --- DoubleConv(Cin -> Cin, residual=True) ---
    h = conv3x3(x0, w1a_ref, cp_in)
    h = _gelu(_groupnorm1(h, g1a_ref[...], b1a_ref[...]))
    h = conv3x3(h, w1b_ref, cp_in)
    h = _groupnorm1(h, g1b_ref[...], b1b_ref[...])
    x1 = _gelu(x0 + h)

    # --- DoubleConv(Cin -> Cout) ---
    h = conv3x3(x1, w2a_ref, cp_in)
    h = _gelu(_groupnorm1(h, g2a_ref[...], b2a_ref[...]))
    h = conv3x3(h, w2b_ref, cp_out)
    x2 = _groupnorm1(h, g2b_ref[...], b2b_ref[...])            # (Cout, H2*W2)

    # --- + time embedding (projection hoisted to the wrapper) ---
    out_ref[0] = (x2 + emb_ref[0]).astype(out_ref.dtype)


# -------------------------------- wrapper --------------------------------------

def down_pallas(x, t, params):
    """Forward of the PyTorch `Down` module. x: (N, Cin, H, W), t: (N, E)."""
    N, Cin, H, W = x.shape
    Cout = params["w2b"].shape[0]
    H2, W2 = H // 2, W // 2
    HW, HW2 = H * W, H2 * W2
    cp_in, cp_out = _rup8(Cin), _rup8(Cout)

    # kernel-layout conv weights: (O, I, 3, 3) -> (O, 9*cp) im2col matrices
    def wmat(w, cp):
        o, i = w.shape[0], w.shape[1]
        m = jnp.transpose(w, (0, 2, 3, 1)).reshape(o, 9, i)     # tap-major
        m = jnp.pad(m, ((0, 0), (0, 0), (0, cp - i)))
        return m.reshape(o, 9 * cp).astype(jnp.float32)

    colv = lambda v: v.reshape(-1, 1).astype(jnp.float32)

    weights = [wmat(params["w1a"], cp_in), colv(params["g1a"]), colv(params["b1a"]),
               wmat(params["w1b"], cp_in), colv(params["g1b"]), colv(params["b1b"]),
               wmat(params["w2a"], cp_in), colv(params["g2a"]), colv(params["b2a"]),
               wmat(params["w2b"], cp_out), colv(params["g2b"]), colv(params["b2b"])]

    # time-embedding projection hoisted to one batched XLA matmul
    emb = (jax.nn.silu(t.astype(jnp.float32)) @ params["we"].astype(jnp.float32)
           + params["be"].astype(jnp.float32))
    emb = emb.reshape(N, Cout, 1)

    # constant tables: stride-2 decimation matrix + 3x3 halo validity masks
    sel_np = np.zeros((HW, HW2), np.float32)
    msk_np = np.zeros((9, HW2), np.float32)
    for q in range(HW2):
        i2, j2 = q // W2, q % W2
        sel_np[2 * i2 * W + 2 * j2, q] = 1.0
        for dy in range(3):
            for dx in range(3):
                if 0 <= i2 + dy - 1 < H2 and 0 <= j2 + dx - 1 < W2:
                    msk_np[dy * 3 + dx, q] = 1.0
    sel = jnp.asarray(sel_np)
    msk = jnp.asarray(msk_np)

    x_flat = x.reshape(N, Cin, HW)      # free reshape (contiguous), stays NCHW

    def const_spec(a):
        zeros = (0,) * a.ndim
        return pl.BlockSpec(a.shape, lambda n, z=zeros: z)

    kernel = functools.partial(_down_kernel, W, W2, H2, cp_in, cp_out)

    out_flat = pl.pallas_call(
        kernel,
        out_shape=jax.ShapeDtypeStruct((N, Cout, HW2), x.dtype),
        grid_spec=pltpu.PrefetchScalarGridSpec(
            num_scalar_prefetch=0,
            grid=(N,),
            in_specs=[pl.BlockSpec((1, Cin, HW), lambda n: (n, 0, 0)),
                      pl.BlockSpec((1, Cout, 1), lambda n: (n, 0, 0)),
                      const_spec(sel), const_spec(msk)]
                     + [const_spec(w) for w in weights],
            out_specs=pl.BlockSpec((1, Cout, HW2), lambda n: (n, 0, 0)),
            scratch_shapes=[pltpu.VMEM((9 * max(cp_in, cp_out), HW2), jnp.float32)],
        ),
        compiler_params=pltpu.CompilerParams(
            dimension_semantics=("parallel",)),   # independent samples -> both v7x TCs
    )(x_flat, emb, sel, msk, *weights)

    return out_flat.reshape(N, Cout, H2, W2)


# --------------------------- params & reference --------------------------------

def init_params(key, cin, cout, emb_dim, dtype=jnp.float32):
    ks = jax.random.split(key, 10)

    def conv_w(k, ci, co):                       # PyTorch OIHW layout
        return jax.random.normal(k, (co, ci, 3, 3), dtype) / np.sqrt(ci * 9.0)

    def affine(k, c):
        k1, k2 = jax.random.split(k)
        return (1.0 + 0.1 * jax.random.normal(k1, (c,), dtype),
                0.1 * jax.random.normal(k2, (c,), dtype))

    p = {}
    p["w1a"] = conv_w(ks[0], cin, cin);   p["g1a"], p["b1a"] = affine(ks[1], cin)
    p["w1b"] = conv_w(ks[2], cin, cin);   p["g1b"], p["b1b"] = affine(ks[3], cin)
    p["w2a"] = conv_w(ks[4], cin, cout);  p["g2a"], p["b2a"] = affine(ks[5], cout)
    p["w2b"] = conv_w(ks[6], cout, cout); p["g2b"], p["b2b"] = affine(ks[7], cout)
    p["we"] = jax.random.normal(ks[8], (emb_dim, cout), dtype) / np.sqrt(emb_dim)
    p["be"] = 0.1 * jax.random.normal(ks[9], (cout,), dtype)
    return p


def reference(x, t, p):
    # Pure-JAX reference (exact erf GELU) for validation.
    gelu = lambda v: 0.5 * v * (1.0 + jax.scipy.special.erf(v * _SQRT_HALF))
    silu = lambda v: v * jax.nn.sigmoid(v)

    def gn(v, g, b):
        mean = jnp.mean(v, axis=(1, 2, 3), keepdims=True)
        var = jnp.mean((v - mean) ** 2, axis=(1, 2, 3), keepdims=True)
        vn = (v - mean) * lax.rsqrt(var + 1e-5)
        return vn * g.reshape(1, -1, 1, 1) + b.reshape(1, -1, 1, 1)

    def conv(v, w_oihw):
        return lax.conv_general_dilated(v, w_oihw, (1, 1), ((1, 1), (1, 1)),
                                        dimension_numbers=("NCHW", "OIHW", "NCHW"))

    N, C, H, W = x.shape
    xp = x.reshape(N, C, H // 2, 2, W // 2, 2).max(axis=(3, 5))
    h = conv(xp, p["w1a"]); h = gelu(gn(h, p["g1a"], p["b1a"]))
    h = conv(h, p["w1b"]); h = gn(h, p["g1b"], p["b1b"])
    x1 = gelu(xp + h)
    h = conv(x1, p["w2a"]); h = gelu(gn(h, p["g2a"], p["b2a"]))
    h = conv(h, p["w2b"]); x2 = gn(h, p["g2b"], p["b2b"])
    emb = silu(t) @ p["we"] + p["be"]
    return x2 + emb[:, :, None, None]


if __name__ == "__main__":
    N, Cin, Cout, H, W, E = 2, 4, 8, 16, 16, 32
    key = jax.random.PRNGKey(0)
    kx, kt, kp = jax.random.split(key, 3)
    x = jax.random.normal(kx, (N, Cin, H, W), jnp.float32)
    t = jax.random.normal(kt, (N, E), jnp.float32)
    params = init_params(kp, Cin, Cout, E)

    out = down_pallas(x, t, params)
    out = jax.block_until_ready(out)

    ref = reference(x, t, params)
    assert out.shape == (N, Cout, H // 2, W // 2), out.shape
    err = float(jnp.max(jnp.abs(out - ref)))
    assert err < 1e-3, f"max abs err {err}"
    print("KERNEL_OK")
</pallas_src>

<mosaic_0001>
module attributes {stable_mosaic.version = 11 : i64} {
  func.func @_down_kernel(%arg0: i32, %arg1: memref<1x4x256xf32, #tpu.memory_space<vmem>>, %arg2: memref<1x8x1xf32, #tpu.memory_space<vmem>>, %arg3: memref<256x64xf32, #tpu.memory_space<vmem>>, %arg4: memref<9x64xf32, #tpu.memory_space<vmem>>, %arg5: memref<4x72xf32, #tpu.memory_space<vmem>>, %arg6: memref<4x1xf32, #tpu.memory_space<vmem>>, %arg7: memref<4x1xf32, #tpu.memory_space<vmem>>, %arg8: memref<4x72xf32, #tpu.memory_space<vmem>>, %arg9: memref<4x1xf32, #tpu.memory_space<vmem>>, %arg10: memref<4x1xf32, #tpu.memory_space<vmem>>, %arg11: memref<8x72xf32, #tpu.memory_space<vmem>>, %arg12: memref<8x1xf32, #tpu.memory_space<vmem>>, %arg13: memref<8x1xf32, #tpu.memory_space<vmem>>, %arg14: memref<8x72xf32, #tpu.memory_space<vmem>>, %arg15: memref<8x1xf32, #tpu.memory_space<vmem>>, %arg16: memref<8x1xf32, #tpu.memory_space<vmem>>, %arg17: memref<1x8x64xf32, #tpu.memory_space<vmem>>, %arg18: memref<72x64xf32, #tpu.memory_space<vmem>>) attributes {dimension_semantics = [#tpu.dimension_semantics<parallel>], iteration_bounds = array<i64: 2>, scalar_prefetch = 0 : i64, scratch_operands = 1 : i64, tpu.core_type = #tpu.core_type<tc>, window_params = [{transform_indices = @transform_0, window_bounds = array<i64: 1, 4, 256>}, {transform_indices = @transform_1, window_bounds = array<i64: 1, 8, 1>}, {pipeline_mode = #tpu.pipeline_mode<synchronous>, transform_indices = @transform_2, window_bounds = array<i64: 256, 64>}, {pipeline_mode = #tpu.pipeline_mode<synchronous>, transform_indices = @transform_3, window_bounds = array<i64: 9, 64>}, {pipeline_mode = #tpu.pipeline_mode<synchronous>, transform_indices = @transform_4, window_bounds = array<i64: 4, 72>}, {pipeline_mode = #tpu.pipeline_mode<synchronous>, transform_indices = @transform_5, window_bounds = array<i64: 4, 1>}, {pipeline_mode = #tpu.pipeline_mode<synchronous>, transform_indices = @transform_6, window_bounds = array<i64: 4, 1>}, {pipeline_mode = #tpu.pipeline_mode<synchronous>, transform_indices = @transform_7, window_bounds = array<i64: 4, 72>}, {pipeline_mode = #tpu.pipeline_mode<synchronous>, transform_indices = @transform_8, window_bounds = array<i64: 4, 1>}, {pipeline_mode = #tpu.pipeline_mode<synchronous>, transform_indices = @transform_9, window_bounds = array<i64: 4, 1>}, {pipeline_mode = #tpu.pipeline_mode<synchronous>, transform_indices = @transform_10, window_bounds = array<i64: 8, 72>}, {pipeline_mode = #tpu.pipeline_mode<synchronous>, transform_indices = @transform_11, window_bounds = array<i64: 8, 1>}, {pipeline_mode = #tpu.pipeline_mode<synchronous>, transform_indices = @transform_12, window_bounds = array<i64: 8, 1>}, {pipeline_mode = #tpu.pipeline_mode<synchronous>, transform_indices = @transform_13, window_bounds = array<i64: 8, 72>}, {pipeline_mode = #tpu.pipeline_mode<synchronous>, transform_indices = @transform_14, window_bounds = array<i64: 8, 1>}, {pipeline_mode = #tpu.pipeline_mode<synchronous>, transform_indices = @transform_15, window_bounds = array<i64: 8, 1>}, {transform_indices = @transform_16, window_bounds = array<i64: 1, 8, 64>}]} {
    %c0 = arith.constant 0 : index
    %c0_0 = arith.constant 0 : index
    %c0_1 = arith.constant 0 : index
    %0 = vector.load %arg1[%c0, %c0_0, %c0_1] : memref<1x4x256xf32, #tpu.memory_space<vmem>>, vector<1x4x256xf32>
    %1 = vector.shape_cast %0 : vector<1x4x256xf32> to vector<4x256xf32>
    %2 = vector.extract_strided_slice %1 {offsets = [0, 1], sizes = [4, 255], strides = [1, 1]} : vector<4x256xf32> to vector<4x255xf32>
    %3 = vector.extract_strided_slice %1 {offsets = [0, 0], sizes = [4, 1], strides = [1, 1]} : vector<4x256xf32> to vector<4x1xf32>
    %4 = tpu.concatenate %2, %3 in 1 : vector<4x255xf32>, vector<4x1xf32> -> vector<4x256xf32>
    %5 = arith.maximumf %1, %4 : vector<4x256xf32>
    %6 = vector.extract_strided_slice %5 {offsets = [0, 16], sizes = [4, 240], strides = [1, 1]} : vector<4x256xf32> to vector<4x240xf32>
    %7 = vector.extract_strided_slice %5 {offsets = [0, 0], sizes = [4, 16], strides = [1, 1]} : vector<4x256xf32> to vector<4x16xf32>
    %8 = tpu.concatenate %6, %7 in 1 : vector<4x240xf32>, vector<4x16xf32> -> vector<4x256xf32>
    %9 = arith.maximumf %5, %8 : vector<4x256xf32>
    %c0_2 = arith.constant 0 : index
    %c0_3 = arith.constant 0 : index
    %10 = vector.load %arg3[%c0_2, %c0_3] : memref<256x64xf32, #tpu.memory_space<vmem>>, vector<256x64xf32>
    %cst = arith.constant dense<0.000000e+00> : vector<4x64xf32>
    %11 = tpu.matmul %9, %10, %cst {dimension_numbers = #tpu.dot_dimension_numbers<[1], [0], [0], [1], [0, 0, 1, 1], [], []>} : vector<4x256xf32>, vector<256x64xf32>, vector<4x64xf32> -> vector<4x64xf32>
    %cst_4 = arith.constant 0.000000e+00 : f32
    %12 = vector.broadcast %cst_4 : f32 to vector<4x64xf32>
    %13 = vector.extract_strided_slice %11 {offsets = [0, 55], sizes = [4, 9], strides = [1, 1]} : vector<4x64xf32> to vector<4x9xf32>
    %14 = vector.extract_strided_slice %11 {offsets = [0, 0], sizes = [4, 55], strides = [1, 1]} : vector<4x64xf32> to vector<4x55xf32>
    %15 = tpu.concatenate %13, %14 in 1 : vector<4x9xf32>, vector<4x55xf32> -> vector<4x64xf32>
    %c0_5 = arith.constant 0 : index
    %c0_6 = arith.constant 0 : index
    %16 = vector.load %arg4[%c0_5, %c0_6] : memref<9x64xf32, #tpu.memory_space<vmem>>, vector<1x64xf32>
    %17 = vector.broadcast %16 : vector<1x64xf32> to vector<4x64xf32>
    %18 = arith.mulf %15, %17 : vector<4x64xf32>
    %19 = tpu.concatenate %18, %12 in 0 : vector<4x64xf32>, vector<4x64xf32> -> vector<8x64xf32>
    %c0_7 = arith.constant 0 : index
    %c0_8 = arith.constant 0 : index
    %20 = vector.load %arg18[%c0_7, %c0_8] : memref<72x64xf32, #tpu.memory_space<vmem>>, vector<8x64xf32>
    tpu.vector_store %arg18[%c0_7, %c0_8], %19 {strides = array<i32>} : memref<72x64xf32, #tpu.memory_space<vmem>>, vector<8x64xf32>,
    %21 = vector.extract_strided_slice %11 {offsets = [0, 56], sizes = [4, 8], strides = [1, 1]} : vector<4x64xf32> to vector<4x8xf32>
    %22 = vector.extract_strided_slice %11 {offsets = [0, 0], sizes = [4, 56], strides = [1, 1]} : vector<4x64xf32> to vector<4x56xf32>
    %23 = tpu.concatenate %21, %22 in 1 : vector<4x8xf32>, vector<4x56xf32> -> vector<4x64xf32>
    %c1 = arith.constant 1 : index
    %c0_9 = arith.constant 0 : index
    %24 = vector.load %arg4[%c1, %c0_9] : memref<9x64xf32, #tpu.memory_space<vmem>>, vector<1x64xf32>
    %25 = vector.broadcast %24 : vector<1x64xf32> to vector<4x64xf32>
    %26 = arith.mulf %23, %25 : vector<4x64xf32>
    %27 = tpu.concatenate %26, %12 in 0 : vector<4x64xf32>, vector<4x64xf32> -> vector<8x64xf32>
    %c8 = arith.constant 8 : index
    %c0_10 = arith.constant 0 : index
    %28 = vector.load %arg18[%c8, %c0_10] : memref<72x64xf32, #tpu.memory_space<vmem>>, vector<8x64xf32>
    tpu.vector_store %arg18[%c8, %c0_10], %27 {strides = array<i32>} : memref<72x64xf32, #tpu.memory_space<vmem>>, vector<8x64xf32>,
    %29 = vector.extract_strided_slice %11 {offsets = [0, 57], sizes = [4, 7], strides = [1, 1]} : vector<4x64xf32> to vector<4x7xf32>
    %30 = vector.extract_strided_slice %11 {offsets = [0, 0], sizes = [4, 57], strides = [1, 1]} : vector<4x64xf32> to vector<4x57xf32>
    %31 = tpu.concatenate %29, %30 in 1 : vector<4x7xf32>, vector<4x57xf32> -> vector<4x64xf32>
    %c2 = arith.constant 2 : index
    %c0_11 = arith.constant 0 : index
    %32 = vector.load %arg4[%c2, %c0_11] : memref<9x64xf32, #tpu.memory_space<vmem>>, vector<1x64xf32>
    %33 = vector.broadcast %32 : vector<1x64xf32> to vector<4x64xf32>
    %34 = arith.mulf %31, %33 : vector<4x64xf32>
    %35 = tpu.concatenate %34, %12 in 0 : vector<4x64xf32>, vector<4x64xf32> -> vector<8x64xf32>
    %c16 = arith.constant 16 : index
    %c0_12 = arith.constant 0 : index
    %36 = vector.load %arg18[%c16, %c0_12] : memref<72x64xf32, #tpu.memory_space<vmem>>, vector<8x64xf32>
    tpu.vector_store %arg18[%c16, %c0_12], %35 {strides = array<i32>} : memref<72x64xf32, #tpu.memory_space<vmem>>, vector<8x64xf32>,
    %37 = vector.extract_strided_slice %11 {offsets = [0, 63], sizes = [4, 1], strides = [1, 1]} : vector<4x64xf32> to vector<4x1xf32>
    %38 = vector.extract_strided_slice %11 {offsets = [0, 0], sizes = [4, 63], strides = [1, 1]} : vector<4x64xf32> to vector<4x63xf32>
    %39 = tpu.concatenate %37, %38 in 1 : vector<4x1xf32>, vector<4x63xf32> -> vector<4x64xf32>
    %c3 = arith.constant 3 : index
    %c0_13 = arith.constant 0 : index
    %40 = vector.load %arg4[%c3, %c0_13] : memref<9x64xf32, #tpu.memory_space<vmem>>, vector<1x64xf32>
    %41 = vector.broadcast %40 : vector<1x64xf32> to vector<4x64xf32>
    %42 = arith.mulf %39, %41 : vector<4x64xf32>
    %43 = tpu.concatenate %42, %12 in 0 : vector<4x64xf32>, vector<4x64xf32> -> vector<8x64xf32>
    %c24 = arith.constant 24 : index
    %c0_14 = arith.constant 0 : index
    %44 = vector.load %arg18[%c24, %c0_14] : memref<72x64xf32, #tpu.memory_space<vmem>>, vector<8x64xf32>
    tpu.vector_store %arg18[%c24, %c0_14], %43 {strides = array<i32>} : memref<72x64xf32, #tpu.memory_space<vmem>>, vector<8x64xf32>,
    %c4 = arith.constant 4 : index
    %c0_15 = arith.constant 0 : index
    %45 = vector.load %arg4[%c4, %c0_15] : memref<9x64xf32, #tpu.memory_space<vmem>>, vector<1x64xf32>
    %46 = vector.broadcast %45 : vector<1x64xf32> to vector<4x64xf32>
    %47 = arith.mulf %11, %46 : vector<4x64xf32>
    %48 = tpu.concatenate %47, %12 in 0 : vector<4x64xf32>, vector<4x64xf32> -> vector<8x64xf32>
    %c32 = arith.constant 32 : index
    %c0_16 = arith.constant 0 : index
    %49 = vector.load %arg18[%c32, %c0_16] : memref<72x64xf32, #tpu.memory_space<vmem>>, vector<8x64xf32>
    tpu.vector_store %arg18[%c32, %c0_16], %48 {strides = array<i32>} : memref<72x64xf32, #tpu.memory_space<vmem>>, vector<8x64xf32>,
    %50 = vector.extract_strided_slice %11 {offsets = [0, 1], sizes = [4, 63], strides = [1, 1]} : vector<4x64xf32> to vector<4x63xf32>
    %51 = vector.extract_strided_slice %11 {offsets = [0, 0], sizes = [4, 1], strides = [1, 1]} : vector<4x64xf32> to vector<4x1xf32>
    %52 = tpu.concatenate %50, %51 in 1 : vector<4x63xf32>, vector<4x1xf32> -> vector<4x64xf32>
    %c5 = arith.constant 5 : index
    %c0_17 = arith.constant 0 : index
    %53 = vector.load %arg4[%c5, %c0_17] : memref<9x64xf32, #tpu.memory_space<vmem>>, vector<1x64xf32>
    %54 = vector.broadcast %53 : vector<1x64xf32> to vector<4x64xf32>
    %55 = arith.mulf %52, %54 : vector<4x64xf32>
    %56 = tpu.concatenate %55, %12 in 0 : vector<4x64xf32>, vector<4x64xf32> -> vector<8x64xf32>
    %c40 = arith.constant 40 : index
    %c0_18 = arith.constant 0 : index
    %57 = vector.load %arg18[%c40, %c0_18] : memref<72x64xf32, #tpu.memory_space<vmem>>, vector<8x64xf32>
    tpu.vector_store %arg18[%c40, %c0_18], %56 {strides = array<i32>} : memref<72x64xf32, #tpu.memory_space<vmem>>, vector<8x64xf32>,
    %58 = vector.extract_strided_slice %11 {offsets = [0, 7], sizes = [4, 57], strides = [1, 1]} : vector<4x64xf32> to vector<4x57xf32>
    %59 = vector.extract_strided_slice %11 {offsets = [0, 0], sizes = [4, 7], strides = [1, 1]} : vector<4x64xf32> to vector<4x7xf32>
    %60 = tpu.concatenate %58, %59 in 1 : vector<4x57xf32>, vector<4x7xf32> -> vector<4x64xf32>
    %c6 = arith.constant 6 : index
    %c0_19 = arith.constant 0 : index
    %61 = vector.load %arg4[%c6, %c0_19] : memref<9x64xf32, #tpu.memory_space<vmem>>, vector<1x64xf32>
    %62 = vector.broadcast %61 : vector<1x64xf32> to vector<4x64xf32>
    %63 = arith.mulf %60, %62 : vector<4x64xf32>
    %64 = tpu.concatenate %63, %12 in 0 : vector<4x64xf32>, vector<4x64xf32> -> vector<8x64xf32>
    %c48 = arith.constant 48 : index
    %c0_20 = arith.constant 0 : index
    %65 = vector.load %arg18[%c48, %c0_20] : memref<72x64xf32, #tpu.memory_space<vmem>>, vector<8x64xf32>
    tpu.vector_store %arg18[%c48, %c0_20], %64 {strides = array<i32>} : memref<72x64xf32, #tpu.memory_space<vmem>>, vector<8x64xf32>,
    %66 = vector.extract_strided_slice %11 {offsets = [0, 8], sizes = [4, 56], strides = [1, 1]} : vector<4x64xf32> to vector<4x56xf32>
    %67 = vector.extract_strided_slice %11 {offsets = [0, 0], sizes = [4, 8], strides = [1, 1]} : vector<4x64xf32> to vector<4x8xf32>
    %68 = tpu.concatenate %66, %67 in 1 : vector<4x56xf32>, vector<4x8xf32> -> vector<4x64xf32>
    %c7 = arith.constant 7 : index
    %c0_21 = arith.constant 0 : index
    %69 = vector.load %arg4[%c7, %c0_21] : memref<9x64xf32, #tpu.memory_space<vmem>>, vector<1x64xf32>
    %70 = vector.broadcast %69 : vector<1x64xf32> to vector<4x64xf32>
    %71 = arith.mulf %68, %70 : vector<4x64xf32>
    %72 = tpu.concatenate %71, %12 in 0 : vector<4x64xf32>, vector<4x64xf32> -> vector<8x64xf32>
    %c56 = arith.constant 56 : index
    %c0_22 = arith.constant 0 : index
    %73 = vector.load %arg18[%c56, %c0_22] : memref<72x64xf32, #tpu.memory_space<vmem>>, vector<8x64xf32>
    tpu.vector_store %arg18[%c56, %c0_22], %72 {strides = array<i32>} : memref<72x64xf32, #tpu.memory_space<vmem>>, vector<8x64xf32>,
    %74 = vector.extract_strided_slice %11 {offsets = [0, 9], sizes = [4, 55], strides = [1, 1]} : vector<4x64xf32> to vector<4x55xf32>
    %75 = vector.extract_strided_slice %11 {offsets = [0, 0], sizes = [4, 9], strides = [1, 1]} : vector<4x64xf32> to vector<4x9xf32>
    %76 = tpu.concatenate %74, %75 in 1 : vector<4x55xf32>, vector<4x9xf32> -> vector<4x64xf32>
    %c8_23 = arith.constant 8 : index
    %c0_24 = arith.constant 0 : index
    %77 = vector.load %arg4[%c8_23, %c0_24] : memref<9x64xf32, #tpu.memory_space<vmem>>, vector<1x64xf32>
    %78 = vector.broadcast %77 : vector<1x64xf32> to vector<4x64xf32>
    %79 = arith.mulf %76, %78 : vector<4x64xf32>
    %80 = tpu.concatenate %79, %12 in 0 : vector<4x64xf32>, vector<4x64xf32> -> vector<8x64xf32>
    %c64 = arith.constant 64 : index
    %c0_25 = arith.constant 0 : index
    %81 = vector.load %arg18[%c64, %c0_25] : memref<72x64xf32, #tpu.memory_space<vmem>>, vector<8x64xf32>
    tpu.vector_store %arg18[%c64, %c0_25], %80 {strides = array<i32>} : memref<72x64xf32, #tpu.memory_space<vmem>>, vector<8x64xf32>,
    %c0_26 = arith.constant 0 : index
    %c0_27 = arith.constant 0 : index
    %82 = vector.load %arg5[%c0_26, %c0_27] : memref<4x72xf32, #tpu.memory_space<vmem>>, vector<4x72xf32>
    %c0_28 = arith.constant 0 : index
    %c0_29 = arith.constant 0 : index
    %83 = vector.load %arg18[%c0_28, %c0_29] : memref<72x64xf32, #tpu.memory_space<vmem>>, vector<72x64xf32>
    %cst_30 = arith.constant dense<0.000000e+00> : vector<4x64xf32>
    %84 = tpu.matmul %82, %83, %cst_30 {dimension_numbers = #tpu.dot_dimension_numbers<[1], [0], [0], [1], [0, 0, 1, 1], [], []>} : vector<4x72xf32>, vector<72x64xf32>, vector<4x64xf32> -> vector<4x64xf32>
    %c0_31 = arith.constant 0 : index
    %c0_32 = arith.constant 0 : index
    %85 = vector.load %arg6[%c0_31, %c0_32] : memref<4x1xf32, #tpu.memory_space<vmem>>, vector<4x1xf32>
    %c0_33 = arith.constant 0 : index
    %c0_34 = arith.constant 0 : index
    %86 = vector.load %arg7[%c0_33, %c0_34] : memref<4x1xf32, #tpu.memory_space<vmem>>, vector<4x1xf32>
    %87 = vector.shape_cast %84 : vector<4x64xf32> to vector<1x4x64xf32>
    %cst_35 = arith.constant dense<0.000000e+00> : vector<1xf32>
    %88 = vector.multi_reduction <add>, %87, %cst_35 [1, 2] : vector<1x4x64xf32> to vector<1xf32>
    %89 = vector.shape_cast %88 : vector<1xf32> to vector<1x1x1xf32>
    %90 = vector.extract %89[0, 0, 0] : f32 from vector<1x1x1xf32>
    %91 = arith.mulf %84, %84 : vector<4x64xf32>
    %92 = vector.shape_cast %91 : vector<4x64xf32> to vector<1x4x64xf32>
    %cst_36 = arith.constant dense<0.000000e+00> : vector<1xf32>
    %93 = vector.multi_reduction <add>, %92, %cst_36 [1, 2] : vector<1x4x64xf32> to vector<1xf32>
    %94 = vector.shape_cast %93 : vector<1xf32> to vector<1x1x1xf32>
    %95 = vector.extract %94[0, 0, 0] : f32 from vector<1x1x1xf32>
    %cst_37 = arith.constant 2.560000e+02 : f32
    %96 = arith.divf %90, %cst_37 : f32
    %cst_38 = arith.constant 2.560000e+02 : f32
    %97 = arith.divf %95, %cst_38 : f32
    %98 = arith.mulf %96, %96 : f32
    %99 = arith.subf %97, %98 : f32
    %cst_39 = arith.constant 0.000000e+00 : f32
    %100 = arith.maximumf %99, %cst_39 : f32
    %101 = vector.broadcast %96 : f32 to vector<4x64xf32>
    %102 = arith.subf %84, %101 : vector<4x64xf32>
    %cst_40 = arith.constant 9.99999974E-6 : f32
    %103 = arith.addf %100, %cst_40 : f32
    %104 = math.rsqrt %103 : f32
    %105 = vector.broadcast %104 : f32 to vector<4x64xf32>
    %106 = arith.mulf %102, %105 : vector<4x64xf32>
    %107 = vector.broadcast %85 : vector<4x1xf32> to vector<4x64xf32>
    %108 = arith.mulf %106, %107 : vector<4x64xf32>
    %109 = vector.broadcast %86 : vector<4x1xf32> to vector<4x64xf32>
    %110 = arith.addf %108, %109 : vector<4x64xf32>
    %cst_41 = arith.constant 5.000000e-01 : f32
    %111 = vector.broadcast %cst_41 : f32 to vector<4x64xf32>
    %112 = arith.mulf %111, %110 : vector<4x64xf32>
    %cst_42 = arith.constant 0.707106769 : f32
    %113 = vector.broadcast %cst_42 : f32 to vector<4x64xf32>
    %114 = arith.mulf %110, %113 : vector<4x64xf32>
    %cst_43 = arith.constant 0.000000e+00 : f32
    %115 = vector.broadcast %cst_43 : f32 to vector<4x64xf32>
    %116 = arith.cmpf olt, %114, %115 : vector<4x64xf32>
    %cst_44 = arith.constant -1.000000e+00 : f32
    %cst_45 = arith.constant 1.000000e+00 : f32
    %117 = vector.broadcast %cst_44 : f32 to vector<4x64xf32>
    %118 = vector.broadcast %cst_45 : f32 to vector<4x64xf32>
    %119 = arith.select %116, %117, %118 : vector<4x64xi1>, vector<4x64xf32>
    %120 = math.absf %114 : vector<4x64xf32>
    %cst_46 = arith.constant 0.327591091 : f32
    %121 = vector.broadcast %cst_46 : f32 to vector<4x64xf32>
    %122 = arith.mulf %121, %120 : vector<4x64xf32>
    %cst_47 = arith.constant 1.000000e+00 : f32
    %123 = vector.broadcast %cst_47 : f32 to vector<4x64xf32>
    %124 = arith.addf %123, %122 : vector<4x64xf32>
    %cst_48 = arith.constant 1.000000e+00 : f32
    %125 = vector.broadcast %cst_48 : f32 to vector<4x64xf32>
    %126 = arith.divf %125, %124 : vector<4x64xf32>
    %cst_49 = arith.constant 1.06140542 : f32
    %127 = vector.broadcast %cst_49 : f32 to vector<4x64xf32>
    %128 = arith.mulf %127, %126 : vector<4x64xf32>
    %cst_50 = arith.constant -1.45315206 : f32
    %129 = vector.broadcast %cst_50 : f32 to vector<4x64xf32>
    %130 = arith.addf %128, %129 : vector<4x64xf32>
    %131 = arith.mulf %130, %126 : vector<4x64xf32>
    %cst_51 = arith.constant 1.42141378 : f32
    %132 = vector.broadcast %cst_51 : f32 to vector<4x64xf32>
    %133 = arith.addf %131, %132 : vector<4x64xf32>
    %134 = arith.mulf %133, %126 : vector<4x64xf32>
    %cst_52 = arith.constant -0.284496725 : f32
    %135 = vector.broadcast %cst_52 : f32 to vector<4x64xf32>
    %136 = arith.addf %134, %135 : vector<4x64xf32>
    %137 = arith.mulf %136, %126 : vector<4x64xf32>
    %cst_53 = arith.constant 0.254829586 : f32
    %138 = vector.broadcast %cst_53 : f32 to vector<4x64xf32>
    %139 = arith.addf %137, %138 : vector<4x64xf32>
    %140 = arith.mulf %139, %126 : vector<4x64xf32>
    %cst_54 = arith.constant 0.000000e+00 : f32
    %141 = vector.broadcast %cst_54 : f32 to vector<4x64xf32>
    %142 = arith.subf %141, %120 : vector<4x64xf32>
    %143 = arith.mulf %142, %120 : vector<4x64xf32>
    %144 = math.exp %143 : vector<4x64xf32>
    %145 = arith.mulf %140, %144 : vector<4x64xf32>
    %cst_55 = arith.constant 1.000000e+00 : f32
    %146 = vector.broadcast %cst_55 : f32 to vector<4x64xf32>
    %147 = arith.subf %146, %145 : vector<4x64xf32>
    %148 = arith.mulf %119, %147 : vector<4x64xf32>
    %cst_56 = arith.constant 1.000000e+00 : f32
    %149 = vector.broadcast %cst_56 : f32 to vector<4x64xf32>
    %150 = arith.addf %149, %148 : vector<4x64xf32>
    %151 = arith.mulf %112, %150 : vector<4x64xf32>
    %cst_57 = arith.constant 0.000000e+00 : f32
    %152 = vector.broadcast %cst_57 : f32 to vector<4x64xf32>
    %153 = vector.extract_strided_slice %151 {offsets = [0, 55], sizes = [4, 9], strides = [1, 1]} : vector<4x64xf32> to vector<4x9xf32>
    %154 = vector.extract_strided_slice %151 {offsets = [0, 0], sizes = [4, 55], strides = [1, 1]} : vector<4x64xf32> to vector<4x55xf32>
    %155 = tpu.concatenate %153, %154 in 1 : vector<4x9xf32>, vector<4x55xf32> -> vector<4x64xf32>
    %c0_58 = arith.constant 0 : index
    %c0_59 = arith.constant 0 : index
    %156 = vector.load %arg4[%c0_58, %c0_59] : memref<9x64xf32, #tpu.memory_space<vmem>>, vector<1x64xf32>
    %157 = vector.broadcast %156 : vector<1x64xf32> to vector<4x64xf32>
    %158 = arith.mulf %155, %157 : vector<4x64xf32>
    %159 = tpu.concatenate %158, %152 in 0 : vector<4x64xf32>, vector<4x64xf32> -> vector<8x64xf32>
    %c0_60 = arith.constant 0 : index
    %c0_61 = arith.constant 0 : index
    %160 = vector.load %arg18[%c0_60, %c0_61] : memref<72x64xf32, #tpu.memory_space<vmem>>, vector<8x64xf32>
    tpu.vector_store %arg18[%c0_60, %c0_61], %159 {strides = array<i32>} : memref<72x64xf32, #tpu.memory_space<vmem>>, vector<8x64xf32>,
    %161 = vector.extract_strided_slice %151 {offsets = [0, 56], sizes = [4, 8], strides = [1, 1]} : vector<4x64xf32> to vector<4x8xf32>
    %162 = vector.extract_strided_slice %151 {offsets = [0, 0], sizes = [4, 56], strides = [1, 1]} : vector<4x64xf32> to vector<4x56xf32>
    %163 = tpu.concatenate %161, %162 in 1 : vector<4x8xf32>, vector<4x56xf32> -> vector<4x64xf32>
    %c1_62 = arith.constant 1 : index
    %c0_63 = arith.constant 0 : index
    %164 = vector.load %arg4[%c1_62, %c0_63] : memref<9x64xf32, #tpu.memory_space<vmem>>, vector<1x64xf32>
    %165 = vector.broadcast %164 : vector<1x64xf32> to vector<4x64xf32>
    %166 = arith.mulf %163, %165 : vector<4x64xf32>
    %167 = tpu.concatenate %166, %152 in 0 : vector<4x64xf32>, vector<4x64xf32> -> vector<8x64xf32>
    %c8_64 = arith.constant 8 : index
    %c0_65 = arith.constant 0 : index
    %168 = vector.load %arg18[%c8_64, %c0_65] : memref<72x64xf32, #tpu.memory_space<vmem>>, vector<8x64xf32>
    tpu.vector_store %arg18[%c8_64, %c0_65], %167 {strides = array<i32>} : memref<72x64xf32, #tpu.memory_space<vmem>>, vector<8x64xf32>,
    %169 = vector.extract_strided_slice %151 {offsets = [0, 57], sizes = [4, 7], strides = [1, 1]} : vector<4x64xf32> to vector<4x7xf32>
    %170 = vector.extract_strided_slice %151 {offsets = [0, 0], sizes = [4, 57], strides = [1, 1]} : vector<4x64xf32> to vector<4x57xf32>
    %171 = tpu.concatenate %169, %170 in 1 : vector<4x7xf32>, vector<4x57xf32> -> vector<4x64xf32>
    %c2_66 = arith.constant 2 : index
    %c0_67 = arith.constant 0 : index
    %172 = vector.load %arg4[%c2_66, %c0_67] : memref<9x64xf32, #tpu.memory_space<vmem>>, vector<1x64xf32>
    %173 = vector.broadcast %172 : vector<1x64xf32> to vector<4x64xf32>
    %174 = arith.mulf %171, %173 : vector<4x64xf32>
    %175 = tpu.concatenate %174, %152 in 0 : vector<4x64xf32>, vector<4x64xf32> -> vector<8x64xf32>
    %c16_68 = arith.constant 16 : index
    %c0_69 = arith.constant 0 : index
    %176 = vector.load %arg18[%c16_68, %c0_69] : memref<72x64xf32, #tpu.memory_space<vmem>>, vector<8x64xf32>
    tpu.vector_store %arg18[%c16_68, %c0_69], %175 {strides = array<i32>} : memref<72x64xf32, #tpu.memory_space<vmem>>, vector<8x64xf32>,
    %177 = vector.extract_strided_slice %151 {offsets = [0, 63], sizes = [4, 1], strides = [1, 1]} : vector<4x64xf32> to vector<4x1xf32>
    %178 = vector.extract_strided_slice %151 {offsets = [0, 0], sizes = [4, 63], strides = [1, 1]} : vector<4x64xf32> to vector<4x63xf32>
    %179 = tpu.concatenate %177, %178 in 1 : vector<4x1xf32>, vector<4x63xf32> -> vector<4x64xf32>
    %c3_70 = arith.constant 3 : index
    %c0_71 = arith.constant 0 : index
    %180 = vector.load %arg4[%c3_70, %c0_71] : memref<9x64xf32, #tpu.memory_space<vmem>>, vector<1x64xf32>
    %181 = vector.broadcast %180 : vector<1x64xf32> to vector<4x64xf32>
    %182 = arith.mulf %179, %181 : vector<4x64xf32>
    %183 = tpu.concatenate %182, %152 in 0 : vector<4x64xf32>, vector<4x64xf32> -> vector<8x64xf32>
    %c24_72 = arith.constant 24 : index
    %c0_73 = arith.constant 0 : index
    %184 = vector.load %arg18[%c24_72, %c0_73] : memref<72x64xf32, #tpu.memory_space<vmem>>, vector<8x64xf32>
    tpu.vector_store %arg18[%c24_72, %c0_73], %183 {strides = array<i32>} : memref<72x64xf32, #tpu.memory_space<vmem>>, vector<8x64xf32>,
    %c4_74 = arith.constant 4 : index
    %c0_75 = arith.constant 0 : index
    %185 = vector.load %arg4[%c4_74, %c0_75] : memref<9x64xf32, #tpu.memory_space<vmem>>, vector<1x64xf32>
    %186 = vector.broadcast %185 : vector<1x64xf32> to vector<4x64xf32>
    %187 = arith.mulf %151, %186 : vector<4x64xf32>
    %188 = tpu.concatenate %187, %152 in 0 : vector<4x64xf32>, vector<4x64xf32> -> vector<8x64xf32>
    %c32_76 = arith.constant 32 : index
    %c0_77 = arith.constant 0 : index
    %189 = vector.load %arg18[%c32_76, %c0_77] : memref<72x64xf32, #tpu.memory_space<vmem>>, vector<8x64xf32>
    tpu.vector_store %arg18[%c32_76, %c0_77], %188 {strides = array<i32>} : memref<72x64xf32, #tpu.memory_space<vmem>>, vector<8x64xf32>,
    %190 = vector.extract_strided_slice %151 {offsets = [0, 1], sizes = [4, 63], strides = [1, 1]} : vector<4x64xf32> to vector<4x63xf32>
    %191 = vector.extract_strided_slice %151 {offsets = [0, 0], sizes = [4, 1], strides = [1, 1]} : vector<4x64xf32> to vector<4x1xf32>
    %192 = tpu.concatenate %190, %191 in 1 : vector<4x63xf32>, vector<4x1xf32> -> vector<4x64xf32>
    %c5_78 = arith.constant 5 : index
    %c0_79 = arith.constant 0 : index
    %193 = vector.load %arg4[%c5_78, %c0_79] : memref<9x64xf32, #tpu.memory_space<vmem>>, vector<1x64xf32>
    %194 = vector.broadcast %193 : vector<1x64xf32> to vector<4x64xf32>
    %195 = arith.mulf %192, %194 : vector<4x64xf32>
    %196 = tpu.concatenate %195, %152 in 0 : vector<4x64xf32>, vector<4x64xf32> -> vector<8x64xf32>
    %c40_80 = arith.constant 40 : index
    %c0_81 = arith.constant 0 : index
    %197 = vector.load %arg18[%c40_80, %c0_81] : memref<72x64xf32, #tpu.memory_space<vmem>>, vector<8x64xf32>
    tpu.vector_store %arg18[%c40_80, %c0_81], %196 {strides = array<i32>} : memref<72x64xf32, #tpu.memory_space<vmem>>, vector<8x64xf32>,
    %198 = vector.extract_strided_slice %151 {offsets = [0, 7], sizes = [4, 57], strides = [1, 1]} : vector<4x64xf32> to vector<4x57xf32>
    %199 = vector.extract_strided_slice %151 {offsets = [0, 0], sizes = [4, 7], strides = [1, 1]} : vector<4x64xf32> to vector<4x7xf32>
    %200 = tpu.concatenate %198, %199 in 1 : vector<4x57xf32>, vector<4x7xf32> -> vector<4x64xf32>
    %c6_82 = arith.constant 6 : index
    %c0_83 = arith.constant 0 : index
    %201 = vector.load %arg4[%c6_82, %c0_83] : memref<9x64xf32, #tpu.memory_space<vmem>>, vector<1x64xf32>
    %202 = vector.broadcast %201 : vector<1x64xf32> to vector<4x64xf32>
    %203 = arith.mulf %200, %202 : vector<4x64xf32>
    %204 = tpu.concatenate %203, %152 in 0 : vector<4x64xf32>, vector<4x64xf32> -> vector<8x64xf32>
    %c48_84 = arith.constant 48 : index
    %c0_85 = arith.constant 0 : index
    %205 = vector.load %arg18[%c48_84, %c0_85] : memref<72x64xf32, #tpu.memory_space<vmem>>, vector<8x64xf32>
    tpu.vector_store %arg18[%c48_84, %c0_85], %204 {strides = array<i32>} : memref<72x64xf32, #tpu.memory_space<vmem>>, vector<8x64xf32>,
    %206 = vector.extract_strided_slice %151 {offsets = [0, 8], sizes = [4, 56], strides = [1, 1]} : vector<4x64xf32> to vector<4x56xf32>
    %207 = vector.extract_strided_slice %151 {offsets = [0, 0], sizes = [4, 8], strides = [1, 1]} : vector<4x64xf32> to vector<4x8xf32>
    %208 = tpu.concatenate %206, %207 in 1 : vector<4x56xf32>, vector<4x8xf32> -> vector<4x64xf32>
    %c7_86 = arith.constant 7 : index
    %c0_87 = arith.constant 0 : index
    %209 = vector.load %arg4[%c7_86, %c0_87] : memref<9x64xf32, #tpu.memory_space<vmem>>, vector<1x64xf32>
    %210 = vector.broadcast %209 : vector<1x64xf32> to vector<4x64xf32>
    %211 = arith.mulf %208, %210 : vector<4x64xf32>
    %212 = tpu.concatenate %211, %152 in 0 : vector<4x64xf32>, vector<4x64xf32> -> vector<8x64xf32>
    %c56_88 = arith.constant 56 : index
    %c0_89 = arith.constant 0 : index
    %213 = vector.load %arg18[%c56_88, %c0_89] : memref<72x64xf32, #tpu.memory_space<vmem>>, vector<8x64xf32>
    tpu.vector_store %arg18[%c56_88, %c0_89], %212 {strides = array<i32>} : memref<72x64xf32, #tpu.memory_space<vmem>>, vector<8x64xf32>,
    %214 = vector.extract_strided_slice %151 {offsets = [0, 9], sizes = [4, 55], strides = [1, 1]} : vector<4x64xf32> to vector<4x55xf32>
    %215 = vector.extract_strided_slice %151 {offsets = [0, 0], sizes = [4, 9], strides = [1, 1]} : vector<4x64xf32> to vector<4x9xf32>
    %216 = tpu.concatenate %214, %215 in 1 : vector<4x55xf32>, vector<4x9xf32> -> vector<4x64xf32>
    %c8_90 = arith.constant 8 : index
    %c0_91 = arith.constant 0 : index
    %217 = vector.load %arg4[%c8_90, %c0_91] : memref<9x64xf32, #tpu.memory_space<vmem>>, vector<1x64xf32>
    %218 = vector.broadcast %217 : vector<1x64xf32> to vector<4x64xf32>
    %219 = arith.mulf %216, %218 : vector<4x64xf32>
    %220 = tpu.concatenate %219, %152 in 0 : vector<4x64xf32>, vector<4x64xf32> -> vector<8x64xf32>
    %c64_92 = arith.constant 64 : index
    %c0_93 = arith.constant 0 : index
    %221 = vector.load %arg18[%c64_92, %c0_93] : memref<72x64xf32, #tpu.memory_space<vmem>>, vector<8x64xf32>
    tpu.vector_store %arg18[%c64_92, %c0_93], %220 {strides = array<i32>} : memref<72x64xf32, #tpu.memory_space<vmem>>, vector<8x64xf32>,
    %c0_94 = arith.constant 0 : index
    %c0_95 = arith.constant 0 : index
    %222 = vector.load %arg8[%c0_94, %c0_95] : memref<4x72xf32, #tpu.memory_space<vmem>>, vector<4x72xf32>
    %c0_96 = arith.constant 0 : index
    %c0_97 = arith.constant 0 : index
    %223 = vector.load %arg18[%c0_96, %c0_97] : memref<72x64xf32, #tpu.memory_space<vmem>>, vector<72x64xf32>
    %cst_98 = arith.constant dense<0.000000e+00> : vector<4x64xf32>
    %224 = tpu.matmul %222, %223, %cst_98 {dimension_numbers = #tpu.dot_dimension_numbers<[1], [0], [0], [1], [0, 0, 1, 1], [], []>} : vector<4x72xf32>, vector<72x64xf32>, vector<4x64xf32> -> vector<4x64xf32>
    %c0_99 = arith.constant 0 : index
    %c0_100 = arith.constant 0 : index
    %225 = vector.load %arg9[%c0_99, %c0_100] : memref<4x1xf32, #tpu.memory_space<vmem>>, vector<4x1xf32>
    %c0_101 = arith.constant 0 : index
    %c0_102 = arith.constant 0 : index
    %226 = vector.load %arg10[%c0_101, %c0_102] : memref<4x1xf32, #tpu.memory_space<vmem>>, vector<4x1xf32>
    %227 = vector.shape_cast %224 : vector<4x64xf32> to vector<1x4x64xf32>
    %cst_103 = arith.constant dense<0.000000e+00> : vector<1xf32>
    %228 = vector.multi_reduction <add>, %227, %cst_103 [1, 2] : vector<1x4x64xf32> to vector<1xf32>
    %229 = vector.shape_cast %228 : vector<1xf32> to vector<1x1x1xf32>
    %230 = vector.extract %229[0, 0, 0] : f32 from vector<1x1x1xf32>
    %231 = arith.mulf %224, %224 : vector<4x64xf32>
    %232 = vector.shape_cast %231 : vector<4x64xf32> to vector<1x4x64xf32>
    %cst_104 = arith.constant dense<0.000000e+00> : vector<1xf32>
    %233 = vector.multi_reduction <add>, %232, %cst_104 [1, 2] : vector<1x4x64xf32> to vector<1xf32>
    %234 = vector.shape_cast %233 : vector<1xf32> to vector<1x1x1xf32>
    %235 = vector.extract %234[0, 0, 0] : f32 from vector<1x1x1xf32>
    %cst_105 = arith.constant 2.560000e+02 : f32
    %236 = arith.divf %230, %cst_105 : f32
    %cst_106 = arith.constant 2.560000e+02 : f32
    %237 = arith.divf %235, %cst_106 : f32
    %238 = arith.mulf %236, %236 : f32
    %239 = arith.subf %237, %238 : f32
    %cst_107 = arith.constant 0.000000e+00 : f32
    %240 = arith.maximumf %239, %cst_107 : f32
    %241 = vector.broadcast %236 : f32 to vector<4x64xf32>
    %242 = arith.subf %224, %241 : vector<4x64xf32>
    %cst_108 = arith.constant 9.99999974E-6 : f32
    %243 = arith.addf %240, %cst_108 : f32
    %244 = math.rsqrt %243 : f32
    %245 = vector.broadcast %244 : f32 to vector<4x64xf32>
    %246 = arith.mulf %242, %245 : vector<4x64xf32>
    %247 = vector.broadcast %225 : vector<4x1xf32> to vector<4x64xf32>
    %248 = arith.mulf %246, %247 : vector<4x64xf32>
    %249 = vector.broadcast %226 : vector<4x1xf32> to vector<4x64xf32>
    %250 = arith.addf %248, %249 : vector<4x64xf32>
    %251 = arith.addf %11, %250 : vector<4x64xf32>
    %cst_109 = arith.constant 5.000000e-01 : f32
    %252 = vector.broadcast %cst_109 : f32 to vector<4x64xf32>
    %253 = arith.mulf %252, %251 : vector<4x64xf32>
    %cst_110 = arith.constant 0.707106769 : f32
    %254 = vector.broadcast %cst_110 : f32 to vector<4x64xf32>
    %255 = arith.mulf %251, %254 : vector<4x64xf32>
    %cst_111 = arith.constant 0.000000e+00 : f32
    %256 = vector.broadcast %cst_111 : f32 to vector<4x64xf32>
    %257 = arith.cmpf olt, %255, %256 : vector<4x64xf32>
    %cst_112 = arith.constant -1.000000e+00 : f32
    %cst_113 = arith.constant 1.000000e+00 : f32
    %258 = vector.broadcast %cst_112 : f32 to vector<4x64xf32>
    %259 = vector.broadcast %cst_113 : f32 to vector<4x64xf32>
    %260 = arith.select %257, %258, %259 : vector<4x64xi1>, vector<4x64xf32>
    %261 = math.absf %255 : vector<4x64xf32>
    %cst_114 = arith.constant 0.327591091 : f32
    %262 = vector.broadcast %cst_114 : f32 to vector<4x64xf32>
    %263 = arith.mulf %262, %261 : vector<4x64xf32>
    %cst_115 = arith.constant 1.000000e+00 : f32
    %264 = vector.broadcast %cst_115 : f32 to vector<4x64xf32>
    %265 = arith.addf %264, %263 : vector<4x64xf32>
    %cst_116 = arith.constant 1.000000e+00 : f32
    %266 = vector.broadcast %cst_116 : f32 to vector<4x64xf32>
    %267 = arith.divf %266, %265 : vector<4x64xf32>
    %cst_117 = arith.constant 1.06140542 : f32
    %268 = vector.broadcast %cst_117 : f32 to vector<4x64xf32>
    %269 = arith.mulf %268, %267 : vector<4x64xf32>
    %cst_118 = arith.constant -1.45315206 : f32
    %270 = vector.broadcast %cst_118 : f32 to vector<4x64xf32>
    %271 = arith.addf %269, %270 : vector<4x64xf32>
    %272 = arith.mulf %271, %267 : vector<4x64xf32>
    %cst_119 = arith.constant 1.42141378 : f32
    %273 = vector.broadcast %cst_119 : f32 to vector<4x64xf32>
    %274 = arith.addf %272, %273 : vector<4x64xf32>
    %275 = arith.mulf %274, %267 : vector<4x64xf32>
    %cst_120 = arith.constant -0.284496725 : f32
    %276 = vector.broadcast %cst_120 : f32 to vector<4x64xf32>
    %277 = arith.addf %275, %276 : vector<4x64xf32>
    %278 = arith.mulf %277, %267 : vector<4x64xf32>
    %cst_121 = arith.constant 0.254829586 : f32
    %279 = vector.broadcast %cst_121 : f32 to vector<4x64xf32>
    %280 = arith.addf %278, %279 : vector<4x64xf32>
    %281 = arith.mulf %280, %267 : vector<4x64xf32>
    %cst_122 = arith.constant 0.000000e+00 : f32
    %282 = vector.broadcast %cst_122 : f32 to vector<4x64xf32>
    %283 = arith.subf %282, %261 : vector<4x64xf32>
    %284 = arith.mulf %283, %261 : vector<4x64xf32>
    %285 = math.exp %284 : vector<4x64xf32>
    %286 = arith.mulf %281, %285 : vector<4x64xf32>
    %cst_123 = arith.constant 1.000000e+00 : f32
    %287 = vector.broadcast %cst_123 : f32 to vector<4x64xf32>
    %288 = arith.subf %287, %286 : vector<4x64xf32>
    %289 = arith.mulf %260, %288 : vector<4x64xf32>
    %cst_124 = arith.constant 1.000000e+00 : f32
    %290 = vector.broadcast %cst_124 : f32 to vector<4x64xf32>
    %291 = arith.addf %290, %289 : vector<4x64xf32>
    %292 = arith.mulf %253, %291 : vector<4x64xf32>
    %cst_125 = arith.constant 0.000000e+00 : f32
    %293 = vector.broadcast %cst_125 : f32 to vector<4x64xf32>
    %294 = vector.extract_strided_slice %292 {offsets = [0, 55], sizes = [4, 9], strides = [1, 1]} : vector<4x64xf32> to vector<4x9xf32>
    %295 = vector.extract_strided_slice %292 {offsets = [0, 0], sizes = [4, 55], strides = [1, 1]} : vector<4x64xf32> to vector<4x55xf32>
    %296 = tpu.concatenate %294, %295 in 1 : vector<4x9xf32>, vector<4x55xf32> -> vector<4x64xf32>
    %c0_126 = arith.constant 0 : index
    %c0_127 = arith.constant 0 : index
    %297 = vector.load %arg4[%c0_126, %c0_127] : memref<9x64xf32, #tpu.memory_space<vmem>>, vector<1x64xf32>
    %298 = vector.broadcast %297 : vector<1x64xf32> to vector<4x64xf32>
    %299 = arith.mulf %296, %298 : vector<4x64xf32>
    %300 = tpu.concatenate %299, %293 in 0 : vector<4x64xf32>, vector<4x64xf32> -> vector<8x64xf32>
    %c0_128 = arith.constant 0 : index
    %c0_129 = arith.constant 0 : index
    %301 = vector.load %arg18[%c0_128, %c0_129] : memref<72x64xf32, #tpu.memory_space<vmem>>, vector<8x64xf32>
    tpu.vector_store %arg18[%c0_128, %c0_129], %300 {strides = array<i32>} : memref<72x64xf32, #tpu.memory_space<vmem>>, vector<8x64xf32>,
    %302 = vector.extract_strided_slice %292 {offsets = [0, 56], sizes = [4, 8], strides = [1, 1]} : vector<4x64xf32> to vector<4x8xf32>
    %303 = vector.extract_strided_slice %292 {offsets = [0, 0], sizes = [4, 56], strides = [1, 1]} : vector<4x64xf32> to vector<4x56xf32>
    %304 = tpu.concatenate %302, %303 in 1 : vector<4x8xf32>, vector<4x56xf32> -> vector<4x64xf32>
    %c1_130 = arith.constant 1 : index
    %c0_131 = arith.constant 0 : index
    %305 = vector.load %arg4[%c1_130, %c0_131] : memref<9x64xf32, #tpu.memory_space<vmem>>, vector<1x64xf32>
    %306 = vector.broadcast %305 : vector<1x64xf32> to vector<4x64xf32>
    %307 = arith.mulf %304, %306 : vector<4x64xf32>
    %308 = tpu.concatenate %307, %293 in 0 : vector<4x64xf32>, vector<4x64xf32> -> vector<8x64xf32>
    %c8_132 = arith.constant 8 : index
    %c0_133 = arith.constant 0 : index
    %309 = vector.load %arg18[%c8_132, %c0_133] : memref<72x64xf32, #tpu.memory_space<vmem>>, vector<8x64xf32>
    tpu.vector_store %arg18[%c8_132, %c0_133], %308 {strides = array<i32>} : memref<72x64xf32, #tpu.memory_space<vmem>>, vector<8x64xf32>,
    %310 = vector.extract_strided_slice %292 {offsets = [0, 57], sizes = [4, 7], strides = [1, 1]} : vector<4x64xf32> to vector<4x7xf32>
    %311 = vector.extract_strided_slice %292 {offsets = [0, 0], sizes = [4, 57], strides = [1, 1]} : vector<4x64xf32> to vector<4x57xf32>
    %312 = tpu.concatenate %310, %311 in 1 : vector<4x7xf32>, vector<4x57xf32> -> vector<4x64xf32>
    %c2_134 = arith.constant 2 : index
    %c0_135 = arith.constant 0 : index
    %313 = vector.load %arg4[%c2_134, %c0_135] : memref<9x64xf32, #tpu.memory_space<vmem>>, vector<1x64xf32>
    %314 = vector.broadcast %313 : vector<1x64xf32> to vector<4x64xf32>
    %315 = arith.mulf %312, %314 : vector<4x64xf32>
    %316 = tpu.concatenate %315, %293 in 0 : vector<4x64xf32>, vector<4x64xf32> -> vector<8x64xf32>
    %c16_136 = arith.constant 16 : index
    %c0_137 = arith.constant 0 : index
    %317 = vector.load %arg18[%c16_136, %c0_137] : memref<72x64xf32, #tpu.memory_space<vmem>>, vector<8x64xf32>
    tpu.vector_store %arg18[%c16_136, %c0_137], %316 {strides = array<i32>} : memref<72x64xf32, #tpu.memory_space<vmem>>, vector<8x64xf32>,
    %318 = vector.extract_strided_slice %292 {offsets = [0, 63], sizes = [4, 1], strides = [1, 1]} : vector<4x64xf32> to vector<4x1xf32>
    %319 = vector.extract_strided_slice %292 {offsets = [0, 0], sizes = [4, 63], strides = [1, 1]} : vector<4x64xf32> to vector<4x63xf32>
    %320 = tpu.concatenate %318, %319 in 1 : vector<4x1xf32>, vector<4x63xf32> -> vector<4x64xf32>
    %c3_138 = arith.constant 3 : index
    %c0_139 = arith.constant 0 : index
    %321 = vector.load %arg4[%c3_138, %c0_139] : memref<9x64xf32, #tpu.memory_space<vmem>>, vector<1x64xf32>
    %322 = vector.broadcast %321 : vector<1x64xf32> to vector<4x64xf32>
    %323 = arith.mulf %320, %322 : vector<4x64xf32>
    %324 = tpu.concatenate %323, %293 in 0 : vector<4x64xf32>, vector<4x64xf32> -> vector<8x64xf32>
    %c24_140 = arith.constant 24 : index
    %c0_141 = arith.constant 0 : index
    %325 = vector.load %arg18[%c24_140, %c0_141] : memref<72x64xf32, #tpu.memory_space<vmem>>, vector<8x64xf32>
    tpu.vector_store %arg18[%c24_140, %c0_141], %324 {strides = array<i32>} : memref<72x64xf32, #tpu.memory_space<vmem>>, vector<8x64xf32>,
    %c4_142 = arith.constant 4 : index
    %c0_143 = arith.constant 0 : index
    %326 = vector.load %arg4[%c4_142, %c0_143] : memref<9x64xf32, #tpu.memory_space<vmem>>, vector<1x64xf32>
    %327 = vector.broadcast %326 : vector<1x64xf32> to vector<4x64xf32>
    %328 = arith.mulf %292, %327 : vector<4x64xf32>
    %329 = tpu.concatenate %328, %293 in 0 : vector<4x64xf32>, vector<4x64xf32> -> vector<8x64xf32>
    %c32_144 = arith.constant 32 : index
    %c0_145 = arith.constant 0 : index
    %330 = vector.load %arg18[%c32_144, %c0_145] : memref<72x64xf32, #tpu.memory_space<vmem>>, vector<8x64xf32>
    tpu.vector_store %arg18[%c32_144, %c0_145], %329 {strides = array<i32>} : memref<72x64xf32, #tpu.memory_space<vmem>>, vector<8x64xf32>,
    %331 = vector.extract_strided_slice %292 {offsets = [0, 1], sizes = [4, 63], strides = [1, 1]} : vector<4x64xf32> to vector<4x63xf32>
    %332 = vector.extract_strided_slice %292 {offsets = [0, 0], sizes = [4, 1], strides = [1, 1]} : vector<4x64xf32> to vector<4x1xf32>
    %333 = tpu.concatenate %331, %332 in 1 : vector<4x63xf32>, vector<4x1xf32> -> vector<4x64xf32>
    %c5_146 = arith.constant 5 : index
    %c0_147 = arith.constant 0 : index
    %334 = vector.load %arg4[%c5_146, %c0_147] : memref<9x64xf32, #tpu.memory_space<vmem>>, vector<1x64xf32>
    %335 = vector.broadcast %334 : vector<1x64xf32> to vector<4x64xf32>
    %336 = arith.mulf %333, %335 : vector<4x64xf32>
    %337 = tpu.concatenate %336, %293 in 0 : vector<4x64xf32>, vector<4x64xf32> -> vector<8x64xf32>
    %c40_148 = arith.constant 40 : index
    %c0_149 = arith.constant 0 : index
    %338 = vector.load %arg18[%c40_148, %c0_149] : memref<72x64xf32, #tpu.memory_space<vmem>>, vector<8x64xf32>
    tpu.vector_store %arg18[%c40_148, %c0_149], %337 {strides = array<i32>} : memref<72x64xf32, #tpu.memory_space<vmem>>, vector<8x64xf32>,
    %339 = vector.extract_strided_slice %292 {offsets = [0, 7], sizes = [4, 57], strides = [1, 1]} : vector<4x64xf32> to vector<4x57xf32>
    %340 = vector.extract_strided_slice %292 {offsets = [0, 0], sizes = [4, 7], strides = [1, 1]} : vector<4x64xf32> to vector<4x7xf32>
    %341 = tpu.concatenate %339, %340 in 1 : vector<4x57xf32>, vector<4x7xf32> -> vector<4x64xf32>
    %c6_150 = arith.constant 6 : index
    %c0_151 = arith.constant 0 : index
    %342 = vector.load %arg4[%c6_150, %c0_151] : memref<9x64xf32, #tpu.memory_space<vmem>>, vector<1x64xf32>
    %343 = vector.broadcast %342 : vector<1x64xf32> to vector<4x64xf32>
    %344 = arith.mulf %341, %343 : vector<4x64xf32>
    %345 = tpu.concatenate %344, %293 in 0 : vector<4x64xf32>, vector<4x64xf32> -> vector<8x64xf32>
    %c48_152 = arith.constant 48 : index
    %c0_153 = arith.constant 0 : index
    %346 = vector.load %arg18[%c48_152, %c0_153] : memref<72x64xf32, #tpu.memory_space<vmem>>, vector<8x64xf32>
    tpu.vector_store %arg18[%c48_152, %c0_153], %345 {strides = array<i32>} : memref<72x64xf32, #tpu.memory_space<vmem>>, vector<8x64xf32>,
    %347 = vector.extract_strided_slice %292 {offsets = [0, 8], sizes = [4, 56], strides = [1, 1]} : vector<4x64xf32> to vector<4x56xf32>
    %348 = vector.extract_strided_slice %292 {offsets = [0, 0], sizes = [4, 8], strides = [1, 1]} : vector<4x64xf32> to vector<4x8xf32>
    %349 = tpu.concatenate %347, %348 in 1 : vector<4x56xf32>, vector<4x8xf32> -> vector<4x64xf32>
    %c7_154 = arith.constant 7 : index
    %c0_155 = arith.constant 0 : index
    %350 = vector.load %arg4[%c7_154, %c0_155] : memref<9x64xf32, #tpu.memory_space<vmem>>, vector<1x64xf32>
    %351 = vector.broadcast %350 : vector<1x64xf32> to vector<4x64xf32>
    %352 = arith.mulf %349, %351 : vector<4x64xf32>
    %353 = tpu.concatenate %352, %293 in 0 : vector<4x64xf32>, vector<4x64xf32> -> vector<8x64xf32>
    %c56_156 = arith.constant 56 : index
    %c0_157 = arith.constant 0 : index
    %354 = vector.load %arg18[%c56_156, %c0_157] : memref<72x64xf32, #tpu.memory_space<vmem>>, vector<8x64xf32>
    tpu.vector_store %arg18[%c56_156, %c0_157], %353 {strides = array<i32>} : memref<72x64xf32, #tpu.memory_space<vmem>>, vector<8x64xf32>,
    %355 = vector.extract_strided_slice %292 {offsets = [0, 9], sizes = [4, 55], strides = [1, 1]} : vector<4x64xf32> to vector<4x55xf32>
    %356 = vector.extract_strided_slice %292 {offsets = [0, 0], sizes = [4, 9], strides = [1, 1]} : vector<4x64xf32> to vector<4x9xf32>
    %357 = tpu.concatenate %355, %356 in 1 : vector<4x55xf32>, vector<4x9xf32> -> vector<4x64xf32>
    %c8_158 = arith.constant 8 : index
    %c0_159 = arith.constant 0 : index
    %358 = vector.load %arg4[%c8_158, %c0_159] : memref<9x64xf32, #tpu.memory_space<vmem>>, vector<1x64xf32>
    %359 = vector.broadcast %358 : vector<1x64xf32> to vector<4x64xf32>
    %360 = arith.mulf %357, %359 : vector<4x64xf32>
    %361 = tpu.concatenate %360, %293 in 0 : vector<4x64xf32>, vector<4x64xf32> -> vector<8x64xf32>
    %c64_160 = arith.constant 64 : index
    %c0_161 = arith.constant 0 : index
    %362 = vector.load %arg18[%c64_160, %c0_161] : memref<72x64xf32, #tpu.memory_space<vmem>>, vector<8x64xf32>
    tpu.vector_store %arg18[%c64_160, %c0_161], %361 {strides = array<i32>} : memref<72x64xf32, #tpu.memory_space<vmem>>, vector<8x64xf32>,
    %c0_162 = arith.constant 0 : index
    %c0_163 = arith.constant 0 : index
    %363 = vector.load %arg11[%c0_162, %c0_163] : memref<8x72xf32, #tpu.memory_space<vmem>>, vector<8x72xf32>
    %c0_164 = arith.constant 0 : index
    %c0_165 = arith.constant 0 : index
    %364 = vector.load %arg18[%c0_164, %c0_165] : memref<72x64xf32, #tpu.memory_space<vmem>>, vector<72x64xf32>
    %cst_166 = arith.constant dense<0.000000e+00> : vector<8x64xf32>
    %365 = tpu.matmul %363, %364, %cst_166 {dimension_numbers = #tpu.dot_dimension_numbers<[1], [0], [0], [1], [0, 0, 1, 1], [], []>} : vector<8x72xf32>, vector<72x64xf32>, vector<8x64xf32> -> vector<8x64xf32>
    %c0_167 = arith.constant 0 : index
    %c0_168 = arith.constant 0 : index
    %366 = vector.load %arg12[%c0_167, %c0_168] : memref<8x1xf32, #tpu.memory_space<vmem>>, vector<8x1xf32>
    %c0_169 = arith.constant 0 : index
    %c0_170 = arith.constant 0 : index
    %367 = vector.load %arg13[%c0_169, %c0_170] : memref<8x1xf32, #tpu.memory_space<vmem>>, vector<8x1xf32>
    %368 = vector.shape_cast %365 : vector<8x64xf32> to vector<1x8x64xf32>
    %cst_171 = arith.constant dense<0.000000e+00> : vector<1xf32>
    %369 = vector.multi_reduction <add>, %368, %cst_171 [1, 2] : vector<1x8x64xf32> to vector<1xf32>
    %370 = vector.shape_cast %369 : vector<1xf32> to vector<1x1x1xf32>
    %371 = vector.extract %370[0, 0, 0] : f32 from vector<1x1x1xf32>
    %372 = arith.mulf %365, %365 : vector<8x64xf32>
    %373 = vector.shape_cast %372 : vector<8x64xf32> to vector<1x8x64xf32>
    %cst_172 = arith.constant dense<0.000000e+00> : vector<1xf32>
    %374 = vector.multi_reduction <add>, %373, %cst_172 [1, 2] : vector<1x8x64xf32> to vector<1xf32>
    %375 = vector.shape_cast %374 : vector<1xf32> to vector<1x1x1xf32>
    %376 = vector.extract %375[0, 0, 0] : f32 from vector<1x1x1xf32>
    %cst_173 = arith.constant 5.120000e+02 : f32
    %377 = arith.divf %371, %cst_173 : f32
    %cst_174 = arith.constant 5.120000e+02 : f32
    %378 = arith.divf %376, %cst_174 : f32
    %379 = arith.mulf %377, %377 : f32
    %380 = arith.subf %378, %379 : f32
    %cst_175 = arith.constant 0.000000e+00 : f32
    %381 = arith.maximumf %380, %cst_175 : f32
    %382 = vector.broadcast %377 : f32 to vector<8x64xf32>
    %383 = arith.subf %365, %382 : vector<8x64xf32>
    %cst_176 = arith.constant 9.99999974E-6 : f32
    %384 = arith.addf %381, %cst_176 : f32
    %385 = math.rsqrt %384 : f32
    %386 = vector.broadcast %385 : f32 to vector<8x64xf32>
    %387 = arith.mulf %383, %386 : vector<8x64xf32>
    %388 = vector.broadcast %366 : vector<8x1xf32> to vector<8x64xf32>
    %389 = arith.mulf %387, %388 : vector<8x64xf32>
    %390 = vector.broadcast %367 : vector<8x1xf32> to vector<8x64xf32>
    %391 = arith.addf %389, %390 : vector<8x64xf32>
    %cst_177 = arith.constant 5.000000e-01 : f32
    %392 = vector.broadcast %cst_177 : f32 to vector<8x64xf32>
    %393 = arith.mulf %392, %391 : vector<8x64xf32>
    %cst_178 = arith.constant 0.707106769 : f32
    %394 = vector.broadcast %cst_178 : f32 to vector<8x64xf32>
    %395 = arith.mulf %391, %394 : vector<8x64xf32>
    %cst_179 = arith.constant 0.000000e+00 : f32
    %396 = vector.broadcast %cst_179 : f32 to vector<8x64xf32>
    %397 = arith.cmpf olt, %395, %396 : vector<8x64xf32>
    %cst_180 = arith.constant -1.000000e+00 : f32
    %cst_181 = arith.constant 1.000000e+00 : f32
    %398 = vector.broadcast %cst_180 : f32 to vector<8x64xf32>
    %399 = vector.broadcast %cst_181 : f32 to vector<8x64xf32>
    %400 = arith.select %397, %398, %399 : vector<8x64xi1>, vector<8x64xf32>
    %401 = math.absf %395 : vector<8x64xf32>
    %cst_182 = arith.constant 0.327591091 : f32
    %402 = vector.broadcast %cst_182 : f32 to vector<8x64xf32>
    %403 = arith.mulf %402, %401 : vector<8x64xf32>
    %cst_183 = arith.constant 1.000000e+00 : f32
    %404 = vector.broadcast %cst_183 : f32 to vector<8x64xf32>
    %405 = arith.addf %404, %403 : vector<8x64xf32>
    %cst_184 = arith.constant 1.000000e+00 : f32
    %406 = vector.broadcast %cst_184 : f32 to vector<8x64xf32>
    %407 = arith.divf %406, %405 : vector<8x64xf32>
    %cst_185 = arith.constant 1.06140542 : f32
    %408 = vector.broadcast %cst_185 : f32 to vector<8x64xf32>
    %409 = arith.mulf %408, %407 : vector<8x64xf32>
    %cst_186 = arith.constant -1.45315206 : f32
    %410 = vector.broadcast %cst_186 : f32 to vector<8x64xf32>
    %411 = arith.addf %409, %410 : vector<8x64xf32>
    %412 = arith.mulf %411, %407 : vector<8x64xf32>
    %cst_187 = arith.constant 1.42141378 : f32
    %413 = vector.broadcast %cst_187 : f32 to vector<8x64xf32>
    %414 = arith.addf %412, %413 : vector<8x64xf32>
    %415 = arith.mulf %414, %407 : vector<8x64xf32>
    %cst_188 = arith.constant -0.284496725 : f32
    %416 = vector.broadcast %cst_188 : f32 to vector<8x64xf32>
    %417 = arith.addf %415, %416 : vector<8x64xf32>
    %418 = arith.mulf %417, %407 : vector<8x64xf32>
    %cst_189 = arith.constant 0.254829586 : f32
    %419 = vector.broadcast %cst_189 : f32 to vector<8x64xf32>
    %420 = arith.addf %418, %419 : vector<8x64xf32>
    %421 = arith.mulf %420, %407 : vector<8x64xf32>
    %cst_190 = arith.constant 0.000000e+00 : f32
    %422 = vector.broadcast %cst_190 : f32 to vector<8x64xf32>
    %423 = arith.subf %422, %401 : vector<8x64xf32>
    %424 = arith.mulf %423, %401 : vector<8x64xf32>
    %425 = math.exp %424 : vector<8x64xf32>
    %426 = arith.mulf %421, %425 : vector<8x64xf32>
    %cst_191 = arith.constant 1.000000e+00 : f32
    %427 = vector.broadcast %cst_191 : f32 to vector<8x64xf32>
    %428 = arith.subf %427, %426 : vector<8x64xf32>
    %429 = arith.mulf %400, %428 : vector<8x64xf32>
    %cst_192 = arith.constant 1.000000e+00 : f32
    %430 = vector.broadcast %cst_192 : f32 to vector<8x64xf32>
    %431 = arith.addf %430, %429 : vector<8x64xf32>
    %432 = arith.mulf %393, %431 : vector<8x64xf32>
    %433 = vector.extract_strided_slice %432 {offsets = [0, 55], sizes = [8, 9], strides = [1, 1]} : vector<8x64xf32> to vector<8x9xf32>
    %434 = vector.extract_strided_slice %432 {offsets = [0, 0], sizes = [8, 55], strides = [1, 1]} : vector<8x64xf32> to vector<8x55xf32>
    %435 = tpu.concatenate %433, %434 in 1 : vector<8x9xf32>, vector<8x55xf32> -> vector<8x64xf32>
    %c0_193 = arith.constant 0 : index
    %c0_194 = arith.constant 0 : index
    %436 = vector.load %arg4[%c0_193, %c0_194] : memref<9x64xf32, #tpu.memory_space<vmem>>, vector<1x64xf32>
    %437 = vector.broadcast %436 : vector<1x64xf32> to vector<8x64xf32>
    %438 = arith.mulf %435, %437 : vector<8x64xf32>
    %c0_195 = arith.constant 0 : index
    %c0_196 = arith.constant 0 : index
    %439 = vector.load %arg18[%c0_195, %c0_196] : memref<72x64xf32, #tpu.memory_space<vmem>>, vector<8x64xf32>
    tpu.vector_store %arg18[%c0_195, %c0_196], %438 {strides = array<i32>} : memref<72x64xf32, #tpu.memory_space<vmem>>, vector<8x64xf32>,
    %440 = vector.extract_strided_slice %432 {offsets = [0, 56], sizes = [8, 8], strides = [1, 1]} : vector<8x64xf32> to vector<8x8xf32>
    %441 = vector.extract_strided_slice %432 {offsets = [0, 0], sizes = [8, 56], strides = [1, 1]} : vector<8x64xf32> to vector<8x56xf32>
    %442 = tpu.concatenate %440, %441 in 1 : vector<8x8xf32>, vector<8x56xf32> -> vector<8x64xf32>
    %c1_197 = arith.constant 1 : index
    %c0_198 = arith.constant 0 : index
    %443 = vector.load %arg4[%c1_197, %c0_198] : memref<9x64xf32, #tpu.memory_space<vmem>>, vector<1x64xf32>
    %444 = vector.broadcast %443 : vector<1x64xf32> to vector<8x64xf32>
    %445 = arith.mulf %442, %444 : vector<8x64xf32>
    %c8_199 = arith.constant 8 : index
    %c0_200 = arith.constant 0 : index
    %446 = vector.load %arg18[%c8_199, %c0_200] : memref<72x64xf32, #tpu.memory_space<vmem>>, vector<8x64xf32>
    tpu.vector_store %arg18[%c8_199, %c0_200], %445 {strides = array<i32>} : memref<72x64xf32, #tpu.memory_space<vmem>>, vector<8x64xf32>,
    %447 = vector.extract_strided_slice %432 {offsets = [0, 57], sizes = [8, 7], strides = [1, 1]} : vector<8x64xf32> to vector<8x7xf32>
    %448 = vector.extract_strided_slice %432 {offsets = [0, 0], sizes = [8, 57], strides = [1, 1]} : vector<8x64xf32> to vector<8x57xf32>
    %449 = tpu.concatenate %447, %448 in 1 : vector<8x7xf32>, vector<8x57xf32> -> vector<8x64xf32>
    %c2_201 = arith.constant 2 : index
    %c0_202 = arith.constant 0 : index
    %450 = vector.load %arg4[%c2_201, %c0_202] : memref<9x64xf32, #tpu.memory_space<vmem>>, vector<1x64xf32>
    %451 = vector.broadcast %450 : vector<1x64xf32> to vector<8x64xf32>
    %452 = arith.mulf %449, %451 : vector<8x64xf32>
    %c16_203 = arith.constant 16 : index
    %c0_204 = arith.constant 0 : index
    %453 = vector.load %arg18[%c16_203, %c0_204] : memref<72x64xf32, #tpu.memory_space<vmem>>, vector<8x64xf32>
    tpu.vector_store %arg18[%c16_203, %c0_204], %452 {strides = array<i32>} : memref<72x64xf32, #tpu.memory_space<vmem>>, vector<8x64xf32>,
    %454 = vector.extract_strided_slice %432 {offsets = [0, 63], sizes = [8, 1], strides = [1, 1]} : vector<8x64xf32> to vector<8x1xf32>
    %455 = vector.extract_strided_slice %432 {offsets = [0, 0], sizes = [8, 63], strides = [1, 1]} : vector<8x64xf32> to vector<8x63xf32>
    %456 = tpu.concatenate %454, %455 in 1 : vector<8x1xf32>, vector<8x63xf32> -> vector<8x64xf32>
    %c3_205 = arith.constant 3 : index
    %c0_206 = arith.constant 0 : index
    %457 = vector.load %arg4[%c3_205, %c0_206] : memref<9x64xf32, #tpu.memory_space<vmem>>, vector<1x64xf32>
    %458 = vector.broadcast %457 : vector<1x64xf32> to vector<8x64xf32>
    %459 = arith.mulf %456, %458 : vector<8x64xf32>
    %c24_207 = arith.constant 24 : index
    %c0_208 = arith.constant 0 : index
    %460 = vector.load %arg18[%c24_207, %c0_208] : memref<72x64xf32, #tpu.memory_space<vmem>>, vector<8x64xf32>
    tpu.vector_store %arg18[%c24_207, %c0_208], %459 {strides = array<i32>} : memref<72x64xf32, #tpu.memory_space<vmem>>, vector<8x64xf32>,
    %c4_209 = arith.constant 4 : index
    %c0_210 = arith.constant 0 : index
    %461 = vector.load %arg4[%c4_209, %c0_210] : memref<9x64xf32, #tpu.memory_space<vmem>>, vector<1x64xf32>
    %462 = vector.broadcast %461 : vector<1x64xf32> to vector<8x64xf32>
    %463 = arith.mulf %432, %462 : vector<8x64xf32>
    %c32_211 = arith.constant 32 : index
    %c0_212 = arith.constant 0 : index
    %464 = vector.load %arg18[%c32_211, %c0_212] : memref<72x64xf32, #tpu.memory_space<vmem>>, vector<8x64xf32>
    tpu.vector_store %arg18[%c32_211, %c0_212], %463 {strides = array<i32>} : memref<72x64xf32, #tpu.memory_space<vmem>>, vector<8x64xf32>,
    %465 = vector.extract_strided_slice %432 {offsets = [0, 1], sizes = [8, 63], strides = [1, 1]} : vector<8x64xf32> to vector<8x63xf32>
    %466 = vector.extract_strided_slice %432 {offsets = [0, 0], sizes = [8, 1], strides = [1, 1]} : vector<8x64xf32> to vector<8x1xf32>
    %467 = tpu.concatenate %465, %466 in 1 : vector<8x63xf32>, vector<8x1xf32> -> vector<8x64xf32>
    %c5_213 = arith.constant 5 : index
    %c0_214 = arith.constant 0 : index
    %468 = vector.load %arg4[%c5_213, %c0_214] : memref<9x64xf32, #tpu.memory_space<vmem>>, vector<1x64xf32>
    %469 = vector.broadcast %468 : vector<1x64xf32> to vector<8x64xf32>
    %470 = arith.mulf %467, %469 : vector<8x64xf32>
    %c40_215 = arith.constant 40 : index
    %c0_216 = arith.constant 0 : index
    %471 = vector.load %arg18[%c40_215, %c0_216] : memref<72x64xf32, #tpu.memory_space<vmem>>, vector<8x64xf32>
    tpu.vector_store %arg18[%c40_215, %c0_216], %470 {strides = array<i32>} : memref<72x64xf32, #tpu.memory_space<vmem>>, vector<8x64xf32>,
    %472 = vector.extract_strided_slice %432 {offsets = [0, 7], sizes = [8, 57], strides = [1, 1]} : vector<8x64xf32> to vector<8x57xf32>
    %473 = vector.extract_strided_slice %432 {offsets = [0, 0], sizes = [8, 7], strides = [1, 1]} : vector<8x64xf32> to vector<8x7xf32>
    %474 = tpu.concatenate %472, %473 in 1 : vector<8x57xf32>, vector<8x7xf32> -> vector<8x64xf32>
    %c6_217 = arith.constant 6 : index
    %c0_218 = arith.constant 0 : index
    %475 = vector.load %arg4[%c6_217, %c0_218] : memref<9x64xf32, #tpu.memory_space<vmem>>, vector<1x64xf32>
    %476 = vector.broadcast %475 : vector<1x64xf32> to vector<8x64xf32>
    %477 = arith.mulf %474, %476 : vector<8x64xf32>
    %c48_219 = arith.constant 48 : index
    %c0_220 = arith.constant 0 : index
    %478 = vector.load %arg18[%c48_219, %c0_220] : memref<72x64xf32, #tpu.memory_space<vmem>>, vector<8x64xf32>
    tpu.vector_store %arg18[%c48_219, %c0_220], %477 {strides = array<i32>} : memref<72x64xf32, #tpu.memory_space<vmem>>, vector<8x64xf32>,
    %479 = vector.extract_strided_slice %432 {offsets = [0, 8], sizes = [8, 56], strides = [1, 1]} : vector<8x64xf32> to vector<8x56xf32>
    %480 = vector.extract_strided_slice %432 {offsets = [0, 0], sizes = [8, 8], strides = [1, 1]} : vector<8x64xf32> to vector<8x8xf32>
    %481 = tpu.concatenate %479, %480 in 1 : vector<8x56xf32>, vector<8x8xf32> -> vector<8x64xf32>
    %c7_221 = arith.constant 7 : index
    %c0_222 = arith.constant 0 : index
    %482 = vector.load %arg4[%c7_221, %c0_222] : memref<9x64xf32, #tpu.memory_space<vmem>>, vector<1x64xf32>
    %483 = vector.broadcast %482 : vector<1x64xf32> to vector<8x64xf32>
    %484 = arith.mulf %481, %483 : vector<8x64xf32>
    %c56_223 = arith.constant 56 : index
    %c0_224 = arith.constant 0 : index
    %485 = vector.load %arg18[%c56_223, %c0_224] : memref<72x64xf32, #tpu.memory_space<vmem>>, vector<8x64xf32>
    tpu.vector_store %arg18[%c56_223, %c0_224], %484 {strides = array<i32>} : memref<72x64xf32, #tpu.memory_space<vmem>>, vector<8x64xf32>,
    %486 = vector.extract_strided_slice %432 {offsets = [0, 9], sizes = [8, 55], strides = [1, 1]} : vector<8x64xf32> to vector<8x55xf32>
    %487 = vector.extract_strided_slice %432 {offsets = [0, 0], sizes = [8, 9], strides = [1, 1]} : vector<8x64xf32> to vector<8x9xf32>
    %488 = tpu.concatenate %486, %487 in 1 : vector<8x55xf32>, vector<8x9xf32> -> vector<8x64xf32>
    %c8_225 = arith.constant 8 : index
    %c0_226 = arith.constant 0 : index
    %489 = vector.load %arg4[%c8_225, %c0_226] : memref<9x64xf32, #tpu.memory_space<vmem>>, vector<1x64xf32>
    %490 = vector.broadcast %489 : vector<1x64xf32> to vector<8x64xf32>
    %491 = arith.mulf %488, %490 : vector<8x64xf32>
    %c64_227 = arith.constant 64 : index
    %c0_228 = arith.constant 0 : index
    %492 = vector.load %arg18[%c64_227, %c0_228] : memref<72x64xf32, #tpu.memory_space<vmem>>, vector<8x64xf32>
    tpu.vector_store %arg18[%c64_227, %c0_228], %491 {strides = array<i32>} : memref<72x64xf32, #tpu.memory_space<vmem>>, vector<8x64xf32>,
    %c0_229 = arith.constant 0 : index
    %c0_230 = arith.constant 0 : index
    %493 = vector.load %arg14[%c0_229, %c0_230] : memref<8x72xf32, #tpu.memory_space<vmem>>, vector<8x72xf32>
    %c0_231 = arith.constant 0 : index
    %c0_232 = arith.constant 0 : index
    %494 = vector.load %arg18[%c0_231, %c0_232] : memref<72x64xf32, #tpu.memory_space<vmem>>, vector<72x64xf32>
    %cst_233 = arith.constant dense<0.000000e+00> : vector<8x64xf32>
    %495 = tpu.matmul %493, %494, %cst_233 {dimension_numbers = #tpu.dot_dimension_numbers<[1], [0], [0], [1], [0, 0, 1, 1], [], []>} : vector<8x72xf32>, vector<72x64xf32>, vector<8x64xf32> -> vector<8x64xf32>
    %c0_234 = arith.constant 0 : index
    %c0_235 = arith.constant 0 : index
    %496 = vector.load %arg15[%c0_234, %c0_235] : memref<8x1xf32, #tpu.memory_space<vmem>>, vector<8x1xf32>
    %c0_236 = arith.constant 0 : index
    %c0_237 = arith.constant 0 : index
    %497 = vector.load %arg16[%c0_236, %c0_237] : memref<8x1xf32, #tpu.memory_space<vmem>>, vector<8x1xf32>
    %498 = vector.shape_cast %495 : vector<8x64xf32> to vector<1x8x64xf32>
    %cst_238 = arith.constant dense<0.000000e+00> : vector<1xf32>
    %499 = vector.multi_reduction <add>, %498, %cst_238 [1, 2] : vector<1x8x64xf32> to vector<1xf32>
    %500 = vector.shape_cast %499 : vector<1xf32> to vector<1x1x1xf32>
    %501 = vector.extract %500[0, 0, 0] : f32 from vector<1x1x1xf32>
    %502 = arith.mulf %495, %495 : vector<8x64xf32>
    %503 = vector.shape_cast %502 : vector<8x64xf32> to vector<1x8x64xf32>
    %cst_239 = arith.constant dense<0.000000e+00> : vector<1xf32>
    %504 = vector.multi_reduction <add>, %503, %cst_239 [1, 2] : vector<1x8x64xf32> to vector<1xf32>
    %505 = vector.shape_cast %504 : vector<1xf32> to vector<1x1x1xf32>
    %506 = vector.extract %505[0, 0, 0] : f32 from vector<1x1x1xf32>
    %cst_240 = arith.constant 5.120000e+02 : f32
    %507 = arith.divf %501, %cst_240 : f32
    %cst_241 = arith.constant 5.120000e+02 : f32
    %508 = arith.divf %506, %cst_241 : f32
    %509 = arith.mulf %507, %507 : f32
    %510 = arith.subf %508, %509 : f32
    %cst_242 = arith.constant 0.000000e+00 : f32
    %511 = arith.maximumf %510, %cst_242 : f32
    %512 = vector.broadcast %507 : f32 to vector<8x64xf32>
    %513 = arith.subf %495, %512 : vector<8x64xf32>
    %cst_243 = arith.constant 9.99999974E-6 : f32
    %514 = arith.addf %511, %cst_243 : f32
    %515 = math.rsqrt %514 : f32
    %516 = vector.broadcast %515 : f32 to vector<8x64xf32>
    %517 = arith.mulf %513, %516 : vector<8x64xf32>
    %518 = vector.broadcast %496 : vector<8x1xf32> to vector<8x64xf32>
    %519 = arith.mulf %517, %518 : vector<8x64xf32>
    %520 = vector.broadcast %497 : vector<8x1xf32> to vector<8x64xf32>
    %521 = arith.addf %519, %520 : vector<8x64xf32>
    %c0_244 = arith.constant 0 : index
    %c0_245 = arith.constant 0 : index
    %c0_246 = arith.constant 0 : index
    %522 = vector.load %arg2[%c0_244, %c0_245, %c0_246] : memref<1x8x1xf32, #tpu.memory_space<vmem>>, vector<1x8x1xf32>
    %523 = vector.shape_cast %522 : vector<1x8x1xf32> to vector<8x1xf32>
    %524 = vector.broadcast %523 : vector<8x1xf32> to vector<8x64xf32>
    %525 = arith.addf %521, %524 : vector<8x64xf32>
    %c0_247 = arith.constant 0 : index
    %c0_248 = arith.constant 0 : index
    %c0_249 = arith.constant 0 : index
    %526 = vector.load %arg17[%c0_247, %c0_248, %c0_249] : memref<1x8x64xf32, #tpu.memory_space<vmem>>, vector<1x8x64xf32>
    %527 = vector.shape_cast %526 : vector<1x8x64xf32> to vector<8x64xf32>
    %528 = vector.shape_cast %525 : vector<8x64xf32> to vector<1x8x64xf32>
    tpu.vector_store %arg17[%c0_247, %c0_248, %c0_249], %528 {strides = array<i32>} : memref<1x8x64xf32, #tpu.memory_space<vmem>>, vector<1x8x64xf32>,
    return
  }
  func.func @transform_0(%arg0: i32) -> (i32, i32, i32) {
    %c0_i32 = arith.constant 0 : i32
    %c0_i32_0 = arith.constant 0 : i32
    %c0_i32_1 = arith.constant 0 : i32
    return %arg0, %c0_i32, %c0_i32_0 : i32, i32, i32
  }
  func.func @transform_1(%arg0: i32) -> (i32, i32, i32) {
    %c0_i32 = arith.constant 0 : i32
    %c0_i32_0 = arith.constant 0 : i32
    %c0_i32_1 = arith.constant 0 : i32
    return %arg0, %c0_i32, %c0_i32_0 : i32, i32, i32
  }
  func.func @transform_2(%arg0: i32) -> (i32, i32) {
    %c0_i32 = arith.constant 0 : i32
    %c0_i32_0 = arith.constant 0 : i32
    %c0_i32_1 = arith.constant 0 : i32
    return %c0_i32, %c0_i32_0 : i32, i32
  }
  func.func @transform_3(%arg0: i32) -> (i32, i32) {
    %c0_i32 = arith.constant 0 : i32
    %c0_i32_0 = arith.constant 0 : i32
    %c0_i32_1 = arith.constant 0 : i32
    return %c0_i32, %c0_i32_0 : i32, i32
  }
  func.func @transform_4(%arg0: i32) -> (i32, i32) {
    %c0_i32 = arith.constant 0 : i32
    %c0_i32_0 = arith.constant 0 : i32
    %c0_i32_1 = arith.constant 0 : i32
    return %c0_i32, %c0_i32_0 : i32, i32
  }
  func.func @transform_5(%arg0: i32) -> (i32, i32) {
    %c0_i32 = arith.constant 0 : i32
    %c0_i32_0 = arith.constant 0 : i32
    %c0_i32_1 = arith.constant 0 : i32
    return %c0_i32, %c0_i32_0 : i32, i32
  }
  func.func @transform_6(%arg0: i32) -> (i32, i32) {
    %c0_i32 = arith.constant 0 : i32
    %c0_i32_0 = arith.constant 0 : i32
    %c0_i32_1 = arith.constant 0 : i32
    return %c0_i32, %c0_i32_0 : i32, i32
  }
  func.func @transform_7(%arg0: i32) -> (i32, i32) {
    %c0_i32 = arith.constant 0 : i32
    %c0_i32_0 = arith.constant 0 : i32
    %c0_i32_1 = arith.constant 0 : i32
    return %c0_i32, %c0_i32_0 : i32, i32
  }
  func.func @transform_8(%arg0: i32) -> (i32, i32) {
    %c0_i32 = arith.constant 0 : i32
    %c0_i32_0 = arith.constant 0 : i32
    %c0_i32_1 = arith.constant 0 : i32
    return %c0_i32, %c0_i32_0 : i32, i32
  }
  func.func @transform_9(%arg0: i32) -> (i32, i32) {
    %c0_i32 = arith.constant 0 : i32
    %c0_i32_0 = arith.constant 0 : i32
    %c0_i32_1 = arith.constant 0 : i32
    return %c0_i32, %c0_i32_0 : i32, i32
  }
  func.func @transform_10(%arg0: i32) -> (i32, i32) {
    %c0_i32 = arith.constant 0 : i32
    %c0_i32_0 = arith.constant 0 : i32
    %c0_i32_1 = arith.constant 0 : i32
    return %c0_i32, %c0_i32_0 : i32, i32
  }
  func.func @transform_11(%arg0: i32) -> (i32, i32) {
    %c0_i32 = arith.constant 0 : i32
    %c0_i32_0 = arith.constant 0 : i32
    %c0_i32_1 = arith.constant 0 : i32
    return %c0_i32, %c0_i32_0 : i32, i32
  }
  func.func @transform_12(%arg0: i32) -> (i32, i32) {
    %c0_i32 = arith.constant 0 : i32
    %c0_i32_0 = arith.constant 0 : i32
    %c0_i32_1 = arith.constant 0 : i32
    return %c0_i32, %c0_i32_0 : i32, i32
  }
  func.func @transform_13(%arg0: i32) -> (i32, i32) {
    %c0_i32 = arith.constant 0 : i32
    %c0_i32_0 = arith.constant 0 : i32
    %c0_i32_1 = arith.constant 0 : i32
    return %c0_i32, %c0_i32_0 : i32, i32
  }
  func.func @transform_14(%arg0: i32) -> (i32, i32) {
    %c0_i32 = arith.constant 0 : i32
    %c0_i32_0 = arith.constant 0 : i32
    %c0_i32_1 = arith.constant 0 : i32
    return %c0_i32, %c0_i32_0 : i32, i32
  }
  func.func @transform_15(%arg0: i32) -> (i32, i32) {
    %c0_i32 = arith.constant 0 : i32
    %c0_i32_0 = arith.constant 0 : i32
    %c0_i32_1 = arith.constant 0 : i32
    return %c0_i32, %c0_i32_0 : i32, i32
  }
  func.func @transform_16(%arg0: i32) -> (i32, i32, i32) {
    %c0_i32 = arith.constant 0 : i32
    %c0_i32_0 = arith.constant 0 : i32
    %c0_i32_1 = arith.constant 0 : i32
    return %arg0, %c0_i32, %c0_i32_0 : i32, i32, i32
  }
}

</mosaic_0001>

<bundles_post_ra>
// kernel: tpu_custom_call.1
= control target key start
LH: loop header
LB: loop body
LE: loop exit
PB: predicated region body
PF: predicated region fallthrough
CT: control target
= control target key end

     0   :  { %s3057_s0 = inlined_call_operand.vmem [shape: f32[2,4,256], index: 0, kind: input, shape index: {}]   ;;  %s3058_s1 = inlined_call_operand.vmem [shape: f32[2,8,1], index: 1, kind: input, shape index: {}]   ;;  %s3059_s2 = inlined_call_operand.vmem [shape: f32[256,64], index: 2, kind: input, shape index: {}]   ;;  %s3060_s3 = inlined_call_operand.vmem [shape: f32[9,64], index: 3, kind: input, shape index: {}]   ;;  %s3061_s4 = inlined_call_operand.vmem [shape: f32[4,72], index: 4, kind: input, shape index: {}]   ;;  %s3062_s5 = inlined_call_operand.vmem [shape: f32[4,1], index: 5, kind: input, shape index: {}]   ;;  %s3063_s6 = inlined_call_operand.vmem [shape: f32[4,1], index: 6, kind: input, shape index: {}]   ;;  %s3064_s7 = inlined_call_operand.vmem [shape: f32[4,72], index: 7, kind: input, shape index: {}]   ;;  %s3065_s8 = inlined_call_operand.vmem [shape: f32[4,1], index: 8, kind: input, shape index: {}]   ;;  %s3066_s9 = inlined_call_operand.vmem [shape: f32[4,1], index: 9, kind: input, shape index: {}]   ;;  %s3067_s10 = inlined_call_operand.vmem [shape: f32[8,72], index: 10, kind: input, shape index: {}]   ;;  %s3068_s11 = inlined_call_operand.vmem [shape: f32[8,1], index: 11, kind: input, shape index: {}]   ;;  %s3069_s12 = inlined_call_operand.vmem [shape: f32[8,1], index: 12, kind: input, shape index: {}]   ;;  %s3070_s13 = inlined_call_operand.vmem [shape: f32[8,72], index: 13, kind: input, shape index: {}]   ;;  %s3071_s14 = inlined_call_operand.vmem [shape: f32[8,1], index: 14, kind: input, shape index: {}]   ;;  %s3072_s15 = inlined_call_operand.vmem [shape: f32[8,1], index: 15, kind: input, shape index: {}]   ;;  %s3073_s16 = inlined_call_operand.hbm [shape: f32[2,8,64], index: 16, kind: output, shape index: {}]  }
   0x1   :  { %3120 = sst [smem:[#allocation15_spill]] %s3057_s0 }
   0x2   :  { %3121 = sst [smem:[#allocation16_spill]] %s3058_s1 }
   0x3   :  { %3122 = sst [smem:[#allocation17_spill]] %s3059_s2 }
   0x4   :  { %3123 = sst [smem:[#allocation18_spill]] %s3061_s4 }
   0x5   :  { %3124 = sst [smem:[#allocation19_spill]] %s3062_s5 }
   0x6   :  { %3125 = sst [smem:[#allocation20_spill]] %s3063_s6 }
   0x7   :  { %3126 = sst [smem:[#allocation21_spill]] %s3064_s7 }
   0x8   :  { %3127 = sst [smem:[#allocation22_spill]] %s3065_s8 }
   0x9   :  { %3128 = sst [smem:[#allocation23_spill]] %s3066_s9 }
   0xa   :  { %3129 = sst [smem:[#allocation24_spill]] %s3070_s13 }
   0xb   :  { %3130 = sst [smem:[#allocation25_spill]] %s3071_s14 }
   0xc   :  { %3131 = sst [smem:[#allocation26_spill]] %s3072_s15 }
   0xd   :  { %3132 = sst [smem:[#allocation27_spill]] %s3073_s16 }
   0xe   :  { %21 = vsyncpa [#allocation4], 0 }
   0xf   :  { %23 = vsyncpa [#allocation4 + $0x1], 0  ;;  %s2481_s21 = smov 0   ;;  %s2483_s22 = smov 0  }
  0x10   :  { %s2485_s23 = smov 0   ;;  %s2487_s24 = smov 0  }
  0x11 LB: > { %3133 = sst [smem:[#allocation6_spill]] %s2358_s21  ;;  %s2502_s25 = sadd.s32 4294967295, %s2370_s24   ;;  %s2370_s24 = sphi %s2487_s24, %s3181_s24   ;;  %s2366_s23 = sphi %s2485_s23, %s3184_s23   ;;  %s2362_s22 = sphi %s2483_s22, %s3183_s22   ;;  %s2358_s21 = sphi %s2481_s21, %s3182_s21  }
  0x12   : > { %3134 = sst [smem:[#allocation7_spill]] %s2362_s22  ;;  %s1907_s26 = sadd.s32 4294967294, %s2370_s24  }
  0x13   : > { %3135 = sst [smem:[#allocation8_spill]] %s2366_s23  ;;  %s2506_s27 = sadd.s32 1, %s2370_s24  }
  0x14   : > { %3136 = sst [smem:[#allocation9_spill]] %s2370_s24  ;;  %s382_s28 = sadd.s32 1, %s2366_s23 }
  0x15   : > { %3137 = sst [smem:[#allocation10_spill]] %s2502_s25  ;;  %s379_s29 = ssub.s32 %s2370_s24, %s2506_s27 }
  0x16   : > { %3138 = sst [smem:[#allocation11_spill]] %s2506_s27  ;;  %p392_p0 = scmp.ne.s32.totalorder %s2366_s23, %s2362_s22 }
  0x17   : > { %p380_p1 = scmp.eq.s32.totalorder %s379_s29, 0  ;;  %p393_p2 = scmp.eq.s32.totalorder %s2502_s25, 1 }
  0x18   : > { %p398_p3 = scmp.ne.s32.totalorder %s2362_s22, %s2358_s21  ;;  %p399_p4 = scmp.eq.s32.totalorder %s1907_s26, 1 }
  0x19   : > { %s2517_s30 = scalar_select %p380_p1, %s2366_s23, %s382_s28  }
  0x1a   : > { %p2519_p5 = por %p393_p2, %p392_p0  ;;  %p2523_p6 = por %p399_p4, %p398_p3 }
  0x1b   : > { %3139 = sst [smem:[#allocation12_spill]] %s2517_s30  ;;  %p1910_p7 = scmp.ge.s32.totalorder %s2370_s24, 1 }
  0x1c   : > { %s3140_s0 = scalar_select %p2519_p5, 1, 0 }
  0x1d   : > { %s3142_s17 = scalar_select %p2523_p6, 1, 0 }
  0x1e   : > { %3141 = sst [smem:[#allocation13_spill]] %s3140_s0  ;;  %p474_p8 = scmp.lt.s32.totalorder %s2370_s24, 3 }
  0x1f   : > { %3143 = sst [smem:[#allocation14_spill]] %s3142_s17 }
  0x20   : > { %p475_p9 = pnand %p1910_p7, %p474_p8 }
  0x21   : > { %p528_p10 = scmp.lt.s32.totalorder (!%p475_p9), %s2502_s25, 1  ;;  %s3144_s28 = sld [smem:[#allocation15_spill]] (!%p475_p9)  ;;  %vm544_vm0 = vcmask (!%p475_p9), 1039360   ;;  %vm559_vm1 = vcmask (!%p475_p9), 916480   ;;  %vm688_vm2 = vcmask (!%p475_p9), 1043456   ;;  %vm690_vm3 = vcmask (!%p475_p9), 523264  }
  0x22   : > { %478 = sbr.rel (%p475_p9) target bundleno = 3298 (0xce2), region = 84  ;;  %s3081_s30 = smov (!%p475_p9), 127   ;;  %vm2390_vm4 = vmmov (!%p475_p9), 0   ;;  %vm680_vm5 = vcmask (!%p475_p9), 72704   ;;  %vm698_vm6 = vcmask (!%p475_p9), 64512   ;;  %vm714_vm7 = vcmask (!%p475_p9), 56320  }
  0x23   : > { %s3145_s2 = sld [smem:[#allocation17_spill]] (!%p475_p9)  ;;  %s2373_s24 = smov (!%p475_p9), 112   ;;  %vm730_vm8 = vcmask (!%p475_p9), 7168   ;;  %vm754_vm9 = vcmask (!%p475_p9), 515072   ;;  %vm770_vm10 = vcmask (!%p475_p9), 465920   ;;  %vm786_vm11 = vcmask (!%p475_p9), 457728  }
  0x24   : > { %s3107_s26 = smov (!%p475_p9), 9   ;;  %s3083_s23 = smov (!%p475_p9), 7   ;;  %vm802_vm12 = vcmask (!%p475_p9), 449536   ;;  %vm822_vm13 = vcmask (!%p475_p9), 588800   ;;  %vm898_vm14 = vcmask (!%p475_p9), 519168  }
  0x25   : > { %s3087_s21 = smov (!%p475_p9), 71   ;;  %s3085_s27 = smov (!%p475_p9), 1  }
  0x26   : > { %s3089_s17 = smov (!%p475_p9), 63   ;;  %s3095_s20 = smov (!%p475_p9), 57  }
  0x27   : > { %s3147_s4 = sld [smem:[#allocation18_spill]] (!%p475_p9)  ;;  %s3148_s5 = sld [smem:[#allocation19_spill]] (!%p475_p9) }
  0x28   : > { %s3149_s6 = sld [smem:[#allocation20_spill]] (!%p475_p9)  ;;  %s3164_s16 = smov (!%p475_p9), 55  }
  0x29   : > { %s2531_s18 = scalar_select %p528_p10, %s2502_s25, 1  ;;  %v584_v2 = vld [vmem:[%s3145_s2 + $0x80] sm:$0xff]  ;;  %v585_v3 = vld [vmem:[%s3145_s2 + $0x88] sm:$0xff]  ;;  %v586_v7 = vld [vmem:[%s3145_s2 + $0x90] sm:$0xff] }
  0x2a   : > { %v568_v4 = vld [vmem:[%s3145_s2] sm:$0xff]  ;;  %v2119_v5 = vpack.c.bf16 %v585_v3, %v584_v2  ;;  %v569_v6 = vld [vmem:[%s3145_s2 + $0x8] sm:$0xff]  ;;  %v587_v8 = vld [vmem:[%s3145_s2 + $0x98] sm:$0xff]  ;;  %s3165_s7 = sld [smem:[#allocation21_spill]]  ;;  %s3166_s9 = sld [smem:[#allocation23_spill]] }
  0x2b   : > { %s3080_s19 = sshll.u32 %s2531_s18, 3  ;;  %v2121_v9 = vpack.c.bf16 %v569_v6, %v568_v4  ;;  %v2123_v10 = vpack.c.bf16 %v587_v8, %v586_v7  ;;  %v570_v11 = vld [vmem:[%s3145_s2 + $0x10] sm:$0xff]  ;;  %v571_v12 = vld [vmem:[%s3145_s2 + $0x18] sm:$0xff]  ;;  %v588_v13 = vld [vmem:[%s3145_s2 + $0xa0] sm:$0xff]  ;;  %v2378_v6 = vmov 0.0|0.0   ;;  %v2391_v7 = vmov 0.0  }
  0x2c   : > { %s532_s29 = scalar_lea.vmem %s3144_s28, %s3080_s19  ;;  %2120 = vmatprep.subr.bf16.mxu0 %v2119_v5  ;;  %v589_v14 = vld [vmem:[%s3145_s2 + $0xa8] sm:$0xff]  ;;  %v2125_v15 = vpack.c.bf16 %v571_v12, %v570_v11  ;;  %v572_v17 = vld [vmem:[%s3145_s2 + $0x20] sm:$0xff]  ;;  %v590_v19 = vld [vmem:[%s3145_s2 + $0xb0] sm:$0xff]  ;;  %s3109_s19 = smov 73   ;;  %2151 = vmatprep.subr.bf16.mxu1 %v2378_v6 }
  0x2d   : > { %v2539_v0 = vld [vmem:[%s532_s29] sm:$0xff]  ;;  %2122 = vmatpush3.bf16.msra.mxu0 %v2121_v9  ;;  %v2127_v16 = vpack.c.bf16 %v589_v14, %v588_v13  ;;  %v573_v18 = vld [vmem:[%s3145_s2 + $0x28] sm:$0xff]  ;;  %v591_v20 = vld [vmem:[%s3145_s2 + $0xb8] sm:$0xff]  ;;  %s3091_s28 = smov 8   ;;  %s3103_s29 = smov 72   ;;  %2053 = vmatprep.mubr.msk.f32.mxu1 %vm2390_vm4, %v2391_v7 }
  0x2e   : > { %540 = vrot.lane.b32.xlu0 %v2539_v0, %s3081_s30  ;;  %v539_v1 = vcombine.high %v2539_v0, %v2539_v0  ;;  %s3146_s30 = smov 127   ;;  %2124 = vmatprep.subr.bf16.mxu0 %v2123_v10  ;;  %v2129_v21 = vpack.c.bf16 %v573_v18, %v572_v17  ;;  %v2131_v22 = vpack.c.bf16 %v591_v20, %v590_v19  ;;  %v574_v23 = vld [vmem:[%s3145_s2 + $0x30] sm:$0xff]  ;;  %v575_v24 = vld [vmem:[%s3145_s2 + $0x38] sm:$0xff]  ;;  %v592_v25 = vld [vmem:[%s3145_s2 + $0xc0] sm:$0xff]  ;;  %s3167_s8 = sld [smem:[#allocation22_spill]] }
  0x2f   : > { %v593_v26 = vld [vmem:[%s3145_s2 + $0xc8] sm:$0xff]  ;;  %v2133_v27 = vpack.c.bf16 %v575_v24, %v574_v23  ;;  %v576_v29 = vld [vmem:[%s3145_s2 + $0x40] sm:$0xff]  ;;  %v594_v32 = vld [vmem:[%s3145_s2 + $0xd0] sm:$0xff]  ;;  %s3168_s1 = smov 0.0  }
  0x30   : > { %v2135_v28 = vpack.c.bf16 %v593_v26, %v592_v25  ;;  %v577_v30 = vld [vmem:[%s3145_s2 + $0x48] sm:$0xff]  ;;  %v595_v33 = vld [vmem:[%s3145_s2 + $0xd8] sm:$0xff]  ;;  %v578_v35 = vld [vmem:[%s3145_s2 + $0x50] sm:$0xff] }
  0x31   : > { %2126 = vmatpush3.bf16.msra.mxu0 %v2125_v15  ;;  %v2137_v31 = vpack.c.bf16 %v577_v30, %v576_v29  ;;  %v2139_v34 = vpack.c.bf16 %v595_v33, %v594_v32  ;;  %v579_v36 = vld [vmem:[%s3145_s2 + $0x58] sm:$0xff]  ;;  %v596_v38 = vld [vmem:[%s3145_s2 + $0xe0] sm:$0xff]  ;;  %v597_v39 = vld [vmem:[%s3145_s2 + $0xe8] sm:$0xff] }
  0x32   : > { %542 = vrot.lane.b32.xlu0 %v539_v1, %s3146_s30  ;;  %2128 = vmatprep.subr.bf16.mxu0 %v2127_v16  ;;  %v2141_v37 = vpack.c.bf16 %v579_v36, %v578_v35  ;;  %v2143_v40 = vpack.c.bf16 %v597_v39, %v596_v38  ;;  %v580_v41 = vld [vmem:[%s3145_s2 + $0x60] sm:$0xff]  ;;  %v581_v42 = vld [vmem:[%s3145_s2 + $0x68] sm:$0xff]  ;;  %v598_v45 = vld [vmem:[%s3145_s2 + $0xf0] sm:$0xff] }
  0x33   : > { %v2145_v44 = vpack.c.bf16 %v581_v42, %v580_v41  ;;  %v599_v46 = vld [vmem:[%s3145_s2 + $0xf8] sm:$0xff]  ;;  %v582_v47 = vld [vmem:[%s3145_s2 + $0x70] sm:$0xff]  ;;  %v2695_v8 = vld [vmem:[%s3060_s3] ss:$0 sm:$0xff] }
  0x34   : > { %v2147_v48 = vpack.c.bf16 %v599_v46, %v598_v45  ;;  %v583_v49 = vld [vmem:[%s3145_s2 + $0x78] sm:$0xff]  ;;  %v2702_v13 = vld [vmem:[%s3060_s3 + $0x1] ss:$0 sm:$0xff]  ;;  %v2711_v19 = vld [vmem:[%s3060_s3 + $0x2] ss:$0 sm:$0xff]  ;;  %s3160_s2 = smov 1  }
  0x35   : > { %2130 = vmatpush3.bf16.msra.mxu0 %v2129_v21  ;;  %v2149_v51 = vpack.c.bf16 %v583_v49, %v582_v47  ;;  %v2720_v25 = vld [vmem:[%s3060_s3 + $0x3] ss:$0 sm:$0xff]  ;;  %v2748_v46 = vld [vmem:[%s3060_s3 + $0x7] ss:$0 sm:$0xff] }
  0x36   : > { %2132 = vmatprep.subr.bf16.mxu0 %v2131_v22 }
  0x39   : > { %2134 = vmatpush3.bf16.msra.mxu0 %v2133_v27 }
  0x3a   : > { %2136 = vmatprep.subr.bf16.mxu0 %v2135_v28 }
  0x3d   : > { %2138 = vmatpush3.bf16.msra.mxu0 %v2137_v31  ;;  %v2729_v31 = vld [vmem:[%s3060_s3 + $0x5] ss:$0 sm:$0xff] }
  0x3e   : > { %2140 = vmatprep.subr.bf16.mxu0 %v2139_v34 }
  0x41   : > { %2142 = vmatpush3.bf16.msra.mxu0 %v2141_v37 }
  0x42   : > { %2144 = vmatprep.subr.bf16.mxu0 %v2143_v40  ;;  %v2738_v40 = vld [vmem:[%s3060_s3 + $0x6] ss:$0 sm:$0xff] }
  0x45   : > { %2146 = vmatpush3.bf16.msra.mxu0 %v2145_v44 }
  0x46   : > { %2148 = vmatprep.subr.bf16.mxu0 %v2147_v48 }
  0x49   : > { %2150 = vmatpush3.bf16.msra.mxu0 %v2149_v51 }
  0x4a   : > { %2175 = vmatprep.subr.bf16.mxu0 %v2378_v6 }
  0xa0   : > { %v541_v43 = vpop.permute.xlu0 %540 }
  0xa4   : > { %v543_v50 = vpop.permute.xlu0 %542 }
  0xa5   : > { %v545_v52 = vsel %vm544_vm0, %v541_v43, %v543_v50  ;;  %v548_v53 = vsel %vm544_vm0, %v543_v50, %v541_v43 }
  0xa6   : > { %v550_v54 = vcombine.low %v545_v52, %v548_v53 }
  0xa8   : > { %v552_v55 = vmax.f32 %v2539_v0, %v550_v54  ;;  %v2646_v0 = vld [vmem:[%s3060_s3 + $0x4] ss:$0 sm:$0xff] }
  0xaa   : > { %555 = vrot.lane.b32.xlu1 %v552_v55, %s2373_s24  ;;  %v554_v56 = vcombine.high %v552_v55, %v552_v55 }
  0xae   : > { %557 = vrot.lane.b32.xlu1 %v554_v56, %s2373_s24  ;;  %s3111_s24 = smov 65  }
 0x11c   : > { %v556_v57 = vpop.permute.xlu1 %555 }
 0x120   : > { %v558_v58 = vpop.permute.xlu1 %557 }
 0x121   : > { %v560_v59 = vsel %vm559_vm1, %v556_v57, %v558_v58  ;;  %v563_v60 = vsel %vm559_vm1, %v558_v58, %v556_v57 }
 0x122   : > { %v565_v61 = vcombine.low %v560_v59, %v563_v60 }
 0x124   : > { %v567_v62 = vmax.f32 %v552_v55, %v565_v61  ;;  %v2757_v55 = vld [vmem:[%s3060_s3 + $0x8] ss:$0 sm:$0xff] }
 0x126   : > { %v601_v63 = vcombine.high %v567_v62, %v567_v62 }
 0x128   : > { %667 = vmatprep.mubr.f32.mxu0 %v601_v63 }
 0x129   : > { %668 = vmatmul.mubr.f32.vlgmr.msra.gmra.mrb[0].mxu0 %v567_v62 }
 0x12a   : > { %2095 = vmatprep.mubr.msk.f32.mxu0 %vm2390_vm4, %v2391_v7 }
 0x1fc   : > { %v1992_v1 = vpop.f32.mrb[0].mxu0 }
 0x1fd   : > { %v1993_v2 = vpop.f32.mrb[1].mxu0 }
 0x1fe   : > { %v2648_v3 = vadd.f32 %v1993_v2, %v1992_v1 }
 0x200   : > { %677 = vrot.lane.b32.xlu1 %v2648_v3, %s3107_s26  ;;  %674 = vrot.lane.b32.xlu0 %v2648_v3, %s3109_s19  ;;  %v745_v4 = vmul.f32 %v2648_v3, %v2646_v0 }
 0x202   : > { %v746_v5 = vsel %vm688_vm2, %v745_v4, 0.0 }
 0x203   : > { %747 = vst.msk [vmem:[#allocation2 + $0x20] sm:$0xff] %vm690_vm3, %v746_v5 }
 0x204   : > { %695 = vrot.lane.b32.xlu1 %v2648_v3, %s3091_s28  ;;  %692 = vrot.lane.b32.xlu0 %v2648_v3, %s3103_s29  ;;  %s3099_s28 = smov 119  }
 0x208   : > { %711 = vrot.lane.b32.xlu1 %v2648_v3, %s3083_s23  ;;  %708 = vrot.lane.b32.xlu0 %v2648_v3, %s3087_s21  ;;  %s3105_s23 = smov 121   ;;  %s3101_s21 = smov 120  }
 0x20a   : > { %v817_v59 = vld [vmem:[#allocation2 + $0x20] sm:$0xff] }
 0x20c   : > { %727 = vrot.lane.b32.xlu1 %v2648_v3, %s3085_s27  ;;  %724 = vrot.lane.b32.xlu0 %v2648_v3, %s3111_s24  ;;  %s3093_s27 = smov 56  }
 0x210   : > { %751 = vrot.lane.b32.xlu1 %v2648_v3, %s3089_s17  ;;  %748 = vrot.lane.b32.xlu0 %v2648_v3, %s3146_s30  ;;  %s3097_s17 = smov 55  }
 0x214   : > { %767 = vrot.lane.b32.xlu1 %v2648_v3, %s3095_s20  ;;  %764 = vrot.lane.b32.xlu0 %v2648_v3, %s3105_s23  ;;  %s3113_s23 = smov 0.0  }
 0x218   : > { %783 = vrot.lane.b32.xlu1 %v2648_v3, %s3093_s27  ;;  %780 = vrot.lane.b32.xlu0 %v2648_v3, %s3101_s21 }
 0x21c   : > { %799 = vrot.lane.b32.xlu1 %v2648_v3, %s3097_s17  ;;  %796 = vrot.lane.b32.xlu0 %v2648_v3, %s3099_s28 }
 0x272   : > { %v678_v9 = vpop.permute.xlu1 %677  ;;  %v675_v10 = vpop.permute.xlu0 %674 }
 0x273   : > { %v681_v11 = vsel %vm680_vm5, %v675_v10, %v678_v9  ;;  %v812_v9 = vld [vmem:[%s3147_s4] sm:$0xf]  ;;  %s3161_s4 = smov 63  }
 0x274   : > { %v687_v12 = vmul.f32 %v2695_v8, %v681_v11 }
 0x276   : > { %v689_v14 = vsel %vm688_vm2, %v687_v12, 0.0  ;;  %v696_v15 = vpop.permute.xlu1 %695  ;;  %v693_v16 = vpop.permute.xlu0 %692 }
 0x277   : > { %691 = vst.msk [vmem:[#allocation2] sm:$0xff] %vm690_vm3, %v689_v14  ;;  %v699_v17 = vsel %vm698_vm6, %v693_v16, %v696_v15 }
 0x278   : > { %v705_v18 = vmul.f32 %v2702_v13, %v699_v17  ;;  %v896_v17 = vld [vmem:[%s3148_s5] sm:$0xf]  ;;  %s3162_s5 = smov 57  }
 0x27a   : > { %v706_v20 = vsel %vm688_vm2, %v705_v18, 0.0  ;;  %v712_v21 = vpop.permute.xlu1 %711  ;;  %v709_v22 = vpop.permute.xlu0 %708  ;;  %v897_v18 = vld [vmem:[%s3149_s6] sm:$0xf]  ;;  %s3163_s6 = smov 56  }
 0x27b   : > { %707 = vst.msk [vmem:[#allocation2 + $0x8] sm:$0xff] %vm690_vm3, %v706_v20  ;;  %v715_v23 = vsel %vm714_vm7, %v709_v22, %v712_v21  ;;  %v2392_v20 = vmov 0  }
 0x27c   : > { %v721_v24 = vmul.f32 %v2711_v19, %v715_v23  ;;  %2285 = vset.pattern.permute.xlu0 %v2392_v20  ;;  %2286 = vset.pattern.permute.xlu1 %v2392_v20 }
 0x27e   : > { %v722_v26 = vsel %vm688_vm2, %v721_v24, 0.0  ;;  %v728_v27 = vpop.permute.xlu1 %727  ;;  %v725_v28 = vpop.permute.xlu0 %724  ;;  %v813_v35 = vld [vmem:[#allocation2] sm:$0xff] }
 0x27f   : > { %723 = vst.msk [vmem:[#allocation2 + $0x10] sm:$0xff] %vm690_vm3, %v722_v26  ;;  %v731_v29 = vsel %vm730_vm8, %v725_v28, %v728_v27 }
 0x280   : > { %v737_v30 = vmul.f32 %v2720_v25, %v731_v29 }
 0x282   : > { %v738_v32 = vsel %vm688_vm2, %v737_v30, 0.0  ;;  %v752_v33 = vpop.permute.xlu1 %751  ;;  %v749_v34 = vpop.permute.xlu0 %748  ;;  %v814_v36 = vld [vmem:[#allocation2 + $0x8] sm:$0xff] }
 0x283   : > { %739 = vst.msk [vmem:[#allocation2 + $0x18] sm:$0xff] %vm690_vm3, %v738_v32  ;;  %v755_v37 = vsel %vm754_vm9, %v749_v34, %v752_v33  ;;  %v2152_v38 = vpack.c.bf16 %v814_v36, %v813_v35 }
 0x284   : > { %v761_v39 = vmul.f32 %v2729_v31, %v755_v37 }
 0x285   : > { %2153 = vmatpush3.bf16.msra.mxu1 %v2152_v38 }
 0x286   : > { %v762_v41 = vsel %vm688_vm2, %v761_v39, 0.0  ;;  %v768_v42 = vpop.permute.xlu1 %767  ;;  %v765_v43 = vpop.permute.xlu0 %764  ;;  %2154 = vmatprep.subr.bf16.mxu1 %v2378_v6  ;;  %v815_v50 = vld [vmem:[#allocation2 + $0x10] sm:$0xff] }
 0x287   : > { %763 = vst.msk [vmem:[#allocation2 + $0x28] sm:$0xff] %vm690_vm3, %v762_v41  ;;  %v771_v44 = vsel %vm770_vm10, %v765_v43, %v768_v42 }
 0x288   : > { %v777_v45 = vmul.f32 %v2738_v40, %v771_v44 }
 0x28a   : > { %v778_v47 = vsel %vm688_vm2, %v777_v45, 0.0  ;;  %v784_v48 = vpop.permute.xlu1 %783  ;;  %v781_v49 = vpop.permute.xlu0 %780  ;;  %v816_v51 = vld [vmem:[#allocation2 + $0x18] sm:$0xff] }
 0x28b   : > { %779 = vst.msk [vmem:[#allocation2 + $0x30] sm:$0xff] %vm690_vm3, %v778_v47  ;;  %v787_v52 = vsel %vm786_vm11, %v781_v49, %v784_v48  ;;  %v2155_v53 = vpack.c.bf16 %v816_v51, %v815_v50 }
 0x28c   : > { %v793_v54 = vmul.f32 %v2748_v46, %v787_v52 }
 0x28d   : > { %2156 = vmatpush3.bf16.msra.mxu1 %v2155_v53 }
 0x28e   : > { %v794_v56 = vsel %vm688_vm2, %v793_v54, 0.0  ;;  %v800_v57 = vpop.permute.xlu1 %799  ;;  %v797_v58 = vpop.permute.xlu0 %796  ;;  %2157 = vmatprep.subr.bf16.mxu1 %v2378_v6  ;;  %v818_v60 = vld [vmem:[#allocation2 + $0x28] sm:$0xff] }
 0x28f   : > { %795 = vst.msk [vmem:[#allocation2 + $0x38] sm:$0xff] %vm690_vm3, %v794_v56  ;;  %v803_v61 = vsel %vm802_vm12, %v797_v58, %v800_v57  ;;  %v2158_v62 = vpack.c.bf16 %v818_v60, %v817_v59 }
 0x290   : > { %v809_v63 = vmul.f32 %v2757_v55, %v803_v61 }
 0x291   : > { %2159 = vmatpush3.bf16.msra.mxu1 %v2158_v62 }
 0x292   : > { %v810_v1 = vsel %vm688_vm2, %v809_v63, 0.0  ;;  %2160 = vmatprep.subr.bf16.mxu1 %v2378_v6  ;;  %v819_v2 = vld [vmem:[#allocation2 + $0x30] sm:$0xff] }
 0x293   : > { %811 = vst.msk [vmem:[#allocation2 + $0x40] sm:$0xff] %vm690_vm3, %v810_v1 }
 0x296   : > { %v820_v4 = vld [vmem:[#allocation2 + $0x38] sm:$0xff] }
 0x297   : > { %v2161_v5 = vpack.c.bf16 %v820_v4, %v819_v2 }
 0x299   : > { %2162 = vmatpush3.bf16.msra.mxu1 %v2161_v5 }
 0x29a   : > { %2051 = vmatprep.subr.mxu1 %v2391_v7  ;;  %v821_v10 = vld [vmem:[#allocation2 + $0x40] sm:$0xff] }
 0x29d   : > { %2052 = vmatpush3.msra.mxu1 %v821_v10 }
 0x29e   : > { %2054 = vmatmul.mubr.msk.f32.vlgmr.msra.gmra.mrb[0].mxu1 %vm822_vm13, %v812_v9  ;;  %2163 = vmatprep.subr.bf16.mxu1 %v2378_v6 }
 0x29f   : > { %2074 = vmatprep.mubr.msk.f32.mxu1 %vm2390_vm4, %v2391_v7 }
 0x371   : > { %v892_v11 = vpop.f32.mrb[0].mxu1 }
 0x372   : > { %v2055_v12 = vpop.f32.mrb[1].mxu1  ;;  %v899_v14 = vsel %vm898_vm14, %v892_v11, 0.0  ;;  %v909_v15 = vmul.f32 %v892_v11, %v892_v11 }
 0x373   : > { %900 = vadd.xlane.f32.xlu0 %v899_v14 }
 0x374   : > { %v910_v16 = vsel %vm898_vm14, %v909_v15, 0.0 }
 0x375   : > { %911 = vadd.xlane.f32.xlu1 %v910_v16 }
 0x386   : > { %945 = vperm.xlu1 %2286, %v897_v18  }
 0x389   : > { %939 = vperm.xlu0 %2285, %v896_v17  }
 0x400   : > { %v901_v21 = vpop.xlane.xlu0 %900 }
 0x401   : > { %v902_v22 = vrot.slane %v901_v21, 4 }
 0x402   : > { %v912_v23 = vpop.xlane.xlu1 %911 }
 0x403   : > { %v903_v24 = vadd.f32 %v902_v22, %v901_v21  ;;  %v913_v26 = vrot.slane %v912_v23, 4 }
 0x405   : > { %v904_v27 = vrot.slane %v903_v24, 2  ;;  %v914_v28 = vadd.f32 %v913_v26, %v912_v23 }
 0x406   : > { %v946_v45 = vpop.permute.xlu1 %945 }
 0x407   : > { %v915_v29 = vrot.slane %v914_v28, 2  ;;  %v905_v30 = vadd.f32 %v904_v27, %v903_v24 }
 0x408   : > { %v940_v43 = vpop.permute.xlu0 %939 }
 0x409   : > { %v906_v32 = vrot.slane %v905_v30, 1  ;;  %v916_v33 = vadd.f32 %v915_v29, %v914_v28 }
 0x40b   : > { %v907_v34 = vadd.f32 %v906_v32, %v905_v30  ;;  %v917_v35 = vrot.slane %v916_v33, 1 }
 0x40d   : > { %2199 = vpush %v907_v34  ;;  %v918_v36 = vadd.f32 %v917_v35, %v916_v33 }
 0x40f   : > { %2201 = vpush %v918_v36 }
 0x43e   : > { %s2200_s28 = spop %2199 }
 0x43f   : > { %s922_s17 = smul.f32 0.00390625, %s2200_s28  ;;  %s3155_s28 = smov 120  }
 0x440   : > { %s2202_s27 = spop %2201 }
 0x441   : > { %s926_s20 = smul.f32 %s922_s17, %s922_s17  ;;  %v929_v37 = vstv %s922_s17  ;;  %s3156_s17 = smov 8  }
 0x442   : > { %s925_s21 = smul.f32 0.00390625, %s2202_s27  ;;  %v930_v38 = vsub.f32 %v892_v11, %v929_v37  ;;  %v2394_v11 = vmov 1.0   ;;  %s3157_s27 = smov 119  }
 0x444   : > { %s927_s29 = ssub.f32 %s925_s21, %s926_s20  ;;  %s3153_s21 = smov 121  }
 0x445   : > { %s3158_s20 = smov 71  }
 0x446   : > { %s928_s26 = smax.f32 %s3113_s23, %s927_s29  ;;  %s3152_s29 = smov 9  }
 0x447   : > { %s931_s19 = sadd.f32 1e-05, %s928_s26  ;;  %s3150_s26 = smov 65  }
 0x448   : > { %s3159_s23 = smov 7  }
 0x449   : > { %v932_v39 = vstv %s931_s19  ;;  %s3151_s19 = smov 73  }
 0x44a   : > { %2288 = vrsqrt.f32 %v932_v39 }
 0x454   : > { %v2289_v41 = vpop.eup %2288 }
 0x455   : > { %2203 = vpush %v2289_v41 }
 0x486   : > { %s2204_s24 = spop %2203 }
 0x487   : > { %v935_v42 = vstv %s2204_s24  ;;  %s3154_s24 = smov 72  }
 0x488   : > { %v936_v44 = vmul.f32 %v935_v42, %v930_v38 }
 0x48a   : > { %v942_v47 = vmul.f32 %v940_v43, %v936_v44 }
 0x48c   : > { %v948_v48 = vadd.f32 %v946_v45, %v942_v47 }
 0x48e   : > { %v950_v49 = vmul.f32 0.70710677, %v948_v48  ;;  %v949_v15 = vmul.f32 0.5, %v948_v48 }
 0x490   : > { %v953_v50 = vand.u32 2147483647, %v950_v49  ;;  %vm951_vm15 = vcmp.lt.f32.partialorder %v950_v49, 0.0 }
 0x491   : > { %v952_v12 = vsel %vm951_vm15, -1.0, %v2394_v11 }
 0x492   : > { %v954_v51 = vmul.f32 0.3275911, %v953_v50  ;;  %v967_v53 = vsub.f32 0.0, %v953_v50 }
 0x494   : > { %v955_v52 = vadd.f32 1.0, %v954_v51  ;;  %v968_v56 = vmul.f32 %v967_v53, %v953_v50 }
 0x496   : > { %2290 = vrcp.f32 %v955_v52  ;;  %v969_v59 = vmul.f32 1.442695, %v968_v56 }
 0x498   : > { %2292 = vpow2.f32 %v969_v59 }
 0x4a0   : > { %v2291_v54 = vpop.eup %2290 }
 0x4a1   : > { %v958_v57 = vmul.f32 1.0614054, %v2291_v54 }
 0x4a2   : > { %v2293_v5 = vpop.eup %2292 }
 0x4a3   : > { %v959_v58 = vadd.f32 -1.4531521, %v958_v57 }
 0x4a5   : > { %v960_v60 = vmul.f32 %v2291_v54, %v959_v58 }
 0x4a7   : > { %v961_v61 = vadd.f32 1.4214138, %v960_v60 }
 0x4a9   : > { %v962_v62 = vmul.f32 %v2291_v54, %v961_v61 }
 0x4ab   : > { %v963_v63 = vadd.f32 -0.28449672, %v962_v62 }
 0x4ad   : > { %v964_v1 = vmul.f32 %v2291_v54, %v963_v63 }
 0x4af   : > { %v965_v2 = vadd.f32 0.2548296, %v964_v1 }
 0x4b1   : > { %v966_v4 = vmul.f32 %v2291_v54, %v965_v2 }
 0x4b3   : > { %v971_v9 = vmul.f32 %v2293_v5, %v966_v4 }
 0x4b5   : > { %v972_v10 = vsub.f32 1.0, %v971_v9 }
 0x4b7   : > { %v973_v14 = vmul.f32 %v972_v10, %v952_v12 }
 0x4b9   : > { %v974_v16 = vadd.f32 1.0, %v973_v14 }
 0x4bb   : > { %v975_v17 = vmul.f32 %v974_v16, %v949_v15 }
 0x4bd   : > { %1022 = vrot.lane.b32.xlu0 %v975_v17, %s3150_s26  ;;  %977 = vrot.lane.b32.xlu1 %v975_v17, %s3151_s19  ;;  %v1042_v18 = vmul.f32 %v2646_v0, %v975_v17 }
 0x4bf   : > { %v1043_v20 = vsel %vm688_vm2, %v1042_v18, 0.0 }
 0x4c0   : > { %1044 = vst.msk [vmem:[#allocation2 + $0x20] sm:$0xff] %vm690_vm3, %v1043_v20 }
 0x4c1   : > { %1045 = vrot.lane.b32.xlu0 %v975_v17, %s3146_s30  ;;  %980 = vrot.lane.b32.xlu1 %v975_v17, %s3152_s29 }
 0x4c5   : > { %1060 = vrot.lane.b32.xlu0 %v975_v17, %s3153_s21  ;;  %992 = vrot.lane.b32.xlu1 %v975_v17, %s3154_s24 }
 0x4c7   : > { %v1110_v10 = vld [vmem:[#allocation2 + $0x20] sm:$0xff] }
 0x4c9   : > { %1075 = vrot.lane.b32.xlu0 %v975_v17, %s3155_s28  ;;  %995 = vrot.lane.b32.xlu1 %v975_v17, %s3156_s17 }
 0x4cd   : > { %1090 = vrot.lane.b32.xlu0 %v975_v17, %s3157_s27  ;;  %1007 = vrot.lane.b32.xlu1 %v975_v17, %s3158_s20 }
 0x4d1   : > { %1010 = vrot.lane.b32.xlu1 %v975_v17, %s3159_s23 }
 0x4d5   : > { %1025 = vrot.lane.b32.xlu1 %v975_v17, %s3160_s2 }
 0x4d9   : > { %1048 = vrot.lane.b32.xlu1 %v975_v17, %s3161_s4 }
 0x4dd   : > { %1063 = vrot.lane.b32.xlu1 %v975_v17, %s3162_s5 }
 0x4e1   : > { %1078 = vrot.lane.b32.xlu1 %v975_v17, %s3163_s6 }
 0x4e5   : > { %1093 = vrot.lane.b32.xlu1 %v975_v17, %s3164_s16 }
 0x52f   : > { %v978_v21 = vpop.permute.xlu1 %977  ;;  %v1023_v32 = vpop.permute.xlu0 %1022 }
 0x533   : > { %v981_v22 = vpop.permute.xlu1 %980  ;;  %v1046_v37 = vpop.permute.xlu0 %1045 }
 0x534   : > { %v983_v23 = vsel %vm680_vm5, %v978_v21, %v981_v22  ;;  %v1105_v22 = vld [vmem:[%s3165_s7] sm:$0xf] }
 0x535   : > { %v989_v24 = vmul.f32 %v2695_v8, %v983_v23 }
 0x537   : > { %v990_v26 = vsel %vm688_vm2, %v989_v24, 0.0  ;;  %v993_v27 = vpop.permute.xlu1 %992  ;;  %v1061_v48 = vpop.permute.xlu0 %1060 }
 0x538   : > { %991 = vst.msk [vmem:[#allocation2] sm:$0xff] %vm690_vm3, %v990_v26 }
 0x53b   : > { %v996_v28 = vpop.permute.xlu1 %995  ;;  %v1076_v57 = vpop.permute.xlu0 %1075 }
 0x53c   : > { %v998_v29 = vsel %vm698_vm6, %v993_v27, %v996_v28 }
 0x53d   : > { %v1004_v30 = vmul.f32 %v2702_v13, %v998_v29 }
 0x53f   : > { %v1005_v33 = vsel %vm688_vm2, %v1004_v30, 0.0  ;;  %v1008_v34 = vpop.permute.xlu1 %1007  ;;  %v1106_v42 = vld [vmem:[#allocation2] sm:$0xff]  ;;  %v1091_v4 = vpop.permute.xlu0 %1090 }
 0x540   : > { %1006 = vst.msk [vmem:[#allocation2 + $0x8] sm:$0xff] %vm690_vm3, %v1005_v33  ;;  %v1189_v30 = vld [vmem:[%s3166_s9] sm:$0xf] }
 0x543   : > { %v1011_v35 = vpop.permute.xlu1 %1010 }
 0x544   : > { %v1013_v36 = vsel %vm714_vm7, %v1008_v34, %v1011_v35 }
 0x545   : > { %v1019_v38 = vmul.f32 %v2711_v19, %v1013_v36 }
 0x547   : > { %v1020_v39 = vsel %vm688_vm2, %v1019_v38, 0.0  ;;  %v1026_v41 = vpop.permute.xlu1 %1025  ;;  %v1107_v43 = vld [vmem:[#allocation2 + $0x8] sm:$0xff] }
 0x548   : > { %1021 = vst.msk [vmem:[#allocation2 + $0x10] sm:$0xff] %vm690_vm3, %v1020_v39  ;;  %v1028_v44 = vsel %vm730_vm8, %v1023_v32, %v1026_v41  ;;  %v2164_v45 = vpack.c.bf16 %v1107_v43, %v1106_v42  ;;  %v1188_v32 = vld [vmem:[%s3167_s8] sm:$0xf] }
 0x549   : > { %v1034_v47 = vmul.f32 %v2720_v25, %v1028_v44 }
 0x54a   : > { %2165 = vmatpush3.bf16.msra.mxu1 %v2164_v45 }
 0x54b   : > { %v1035_v49 = vsel %vm688_vm2, %v1034_v47, 0.0  ;;  %v1049_v50 = vpop.permute.xlu1 %1048  ;;  %2166 = vmatprep.subr.bf16.mxu1 %v2378_v6 }
 0x54c   : > { %1036 = vst.msk [vmem:[#allocation2 + $0x18] sm:$0xff] %vm690_vm3, %v1035_v49  ;;  %v1051_v51 = vsel %vm754_vm9, %v1046_v37, %v1049_v50 }
 0x54d   : > { %v1057_v52 = vmul.f32 %v2729_v31, %v1051_v51 }
 0x54f   : > { %v1058_v53 = vsel %vm688_vm2, %v1057_v52, 0.0  ;;  %v1064_v54 = vpop.permute.xlu1 %1063  ;;  %v1108_v61 = vld [vmem:[#allocation2 + $0x10] sm:$0xff] }
 0x550   : > { %1059 = vst.msk [vmem:[#allocation2 + $0x28] sm:$0xff] %vm690_vm3, %v1058_v53  ;;  %v1066_v56 = vsel %vm770_vm10, %v1061_v48, %v1064_v54 }
 0x551   : > { %v1072_v58 = vmul.f32 %v2738_v40, %v1066_v56 }
 0x553   : > { %v1073_v59 = vsel %vm688_vm2, %v1072_v58, 0.0  ;;  %v1079_v60 = vpop.permute.xlu1 %1078  ;;  %v1109_v62 = vld [vmem:[#allocation2 + $0x18] sm:$0xff] }
 0x554   : > { %1074 = vst.msk [vmem:[#allocation2 + $0x30] sm:$0xff] %vm690_vm3, %v1073_v59  ;;  %v1081_v63 = vsel %vm786_vm11, %v1076_v57, %v1079_v60  ;;  %v2167_v1 = vpack.c.bf16 %v1109_v62, %v1108_v61 }
 0x555   : > { %v1087_v2 = vmul.f32 %v2748_v46, %v1081_v63 }
 0x556   : > { %2168 = vmatpush3.bf16.msra.mxu1 %v2167_v1 }
 0x557   : > { %v1088_v5 = vsel %vm688_vm2, %v1087_v2, 0.0  ;;  %v1094_v9 = vpop.permute.xlu1 %1093  ;;  %2169 = vmatprep.subr.bf16.mxu1 %v2378_v6  ;;  %v1111_v12 = vld [vmem:[#allocation2 + $0x28] sm:$0xff] }
 0x558   : > { %1089 = vst.msk [vmem:[#allocation2 + $0x38] sm:$0xff] %vm690_vm3, %v1088_v5  ;;  %v1096_v14 = vsel %vm802_vm12, %v1091_v4, %v1094_v9  ;;  %v2170_v15 = vpack.c.bf16 %v1111_v12, %v1110_v10 }
 0x559   : > { %v1102_v16 = vmul.f32 %v2757_v55, %v1096_v14 }
 0x55a   : > { %2171 = vmatpush3.bf16.msra.mxu1 %v2170_v15 }
 0x55b   : > { %v1103_v17 = vsel %vm688_vm2, %v1102_v16, 0.0  ;;  %2172 = vmatprep.subr.bf16.mxu1 %v2378_v6  ;;  %v1112_v18 = vld [vmem:[#allocation2 + $0x30] sm:$0xff] }
 0x55c   : > { %1104 = vst.msk [vmem:[#allocation2 + $0x40] sm:$0xff] %vm690_vm3, %v1103_v17 }
 0x55f   : > { %v1113_v20 = vld [vmem:[#allocation2 + $0x38] sm:$0xff] }
 0x560   : > { %v2173_v21 = vpack.c.bf16 %v1113_v20, %v1112_v18 }
 0x562   : > { %2174 = vmatpush3.bf16.msra.mxu1 %v2173_v21 }
 0x563   : > { %2072 = vmatprep.subr.mxu1 %v2391_v7  ;;  %v1114_v23 = vld [vmem:[#allocation2 + $0x40] sm:$0xff] }
 0x566   : > { %2073 = vmatpush3.msra.mxu1 %v1114_v23 }
 0x567   : > { %2075 = vmatmul.mubr.msk.f32.vlgmr.msra.gmra.mrb[2].mxu1 %vm822_vm13, %v1105_v22  ;;  %2187 = vmatprep.subr.bf16.mxu1 %v2378_v6 }
 0x568   : > { %2116 = vmatprep.mubr.msk.f32.mxu1 %vm2390_vm4, %v2391_v7 }
 0x63a   : > { %v1184_v24 = vpop.f32.mrb[2].mxu1 }
 0x63b   : > { %v2076_v26 = vpop.f32.mrb[3].mxu1  ;;  %v1190_v27 = vsel %vm898_vm14, %v1184_v24, 0.0  ;;  %v1200_v28 = vmul.f32 %v1184_v24, %v1184_v24 }
 0x63c   : > { %1191 = vadd.xlane.f32.xlu0 %v1190_v27 }
 0x63d   : > { %v1201_v29 = vsel %vm898_vm14, %v1200_v28, 0.0 }
 0x63e   : > { %1202 = vadd.xlane.f32.xlu1 %v1201_v29 }
 0x64f   : > { %1236 = vperm.xlu1 %2286, %v1189_v30  }
 0x652   : > { %1230 = vperm.xlu0 %2285, %v1188_v32  }
 0x6c9   : > { %v1192_v33 = vpop.xlane.xlu0 %1191 }
 0x6ca   : > { %v1193_v34 = vrot.slane %v1192_v33, 4 }
 0x6cb   : > { %v1203_v35 = vpop.xlane.xlu1 %1202 }
 0x6cc   : > { %v1194_v36 = vadd.f32 %v1193_v34, %v1192_v33  ;;  %v1204_v37 = vrot.slane %v1203_v35, 4 }
 0x6ce   : > { %v1195_v38 = vrot.slane %v1194_v36, 2  ;;  %v1205_v39 = vadd.f32 %v1204_v37, %v1203_v35 }
 0x6cf   : > { %v1237_v58 = vpop.permute.xlu1 %1236 }
 0x6d0   : > { %v1206_v41 = vrot.slane %v1205_v39, 2  ;;  %v1196_v42 = vadd.f32 %v1195_v38, %v1194_v36 }
 0x6d1   : > { %v1231_v56 = vpop.permute.xlu0 %1230 }
 0x6d2   : > { %v1197_v43 = vrot.slane %v1196_v42, 1  ;;  %v1207_v44 = vadd.f32 %v1206_v41, %v1205_v39 }
 0x6d4   : > { %v1198_v45 = vadd.f32 %v1197_v43, %v1196_v42  ;;  %v1208_v47 = vrot.slane %v1207_v44, 1 }
 0x6d6   : > { %2205 = vpush %v1198_v45  ;;  %v1209_v48 = vadd.f32 %v1208_v47, %v1207_v44 }
 0x6d8   : > { %2207 = vpush %v1209_v48 }
 0x707   : > { %s2206_s25 = spop %2205 }
 0x708   : > { %s1213_s7 = smul.f32 0.00390625, %s2206_s25 }
 0x709   : > { %s2208_s22 = spop %2207 }
 0x70a   : > { %s1217_s0 = smul.f32 %s1213_s7, %s1213_s7  ;;  %v1220_v49 = vstv %s1213_s7 }
 0x70b   : > { %s1216_s8 = smul.f32 0.00390625, %s2208_s22  ;;  %v1221_v50 = vsub.f32 %v1184_v24, %v1220_v49 }
 0x70d   : > { %s1218_s9 = ssub.f32 %s1216_s8, %s1217_s0 }
 0x70f   : > { %s1219_s14 = smax.f32 %s3168_s1, %s1218_s9 }
 0x710   : > { %s1222_s15 = sadd.f32 1e-05, %s1219_s14 }
 0x712   : > { %v1223_v51 = vstv %s1222_s15 }
 0x713   : > { %2294 = vrsqrt.f32 %v1223_v51 }
 0x71d   : > { %v2295_v52 = vpop.eup %2294 }
 0x71e   : > { %2209 = vpush %v2295_v52 }
 0x74f   : > { %s2210_s13 = spop %2209 }
 0x750   : > { %v1226_v53 = vstv %s2210_s13 }
 0x751   : > { %v1227_v54 = vmul.f32 %v1226_v53, %v1221_v50 }
 0x753   : > { %v1233_v57 = vmul.f32 %v1231_v56, %v1227_v54 }
 0x755   : > { %v1239_v59 = vadd.f32 %v1237_v58, %v1233_v57 }
 0x757   : > { %v1240_v60 = vadd.f32 %v2648_v3, %v1239_v59 }
 0x759   : > { %v1242_v61 = vmul.f32 0.70710677, %v1240_v60  ;;  %v1241_v27 = vmul.f32 0.5, %v1240_v60 }
 0x75b   : > { %v1245_v62 = vand.u32 2147483647, %v1242_v61  ;;  %vm1243_vm0 = vcmp.lt.f32.partialorder %v1242_v61, 0.0 }
 0x75c   : > { %v1244_v24 = vsel %vm1243_vm0, -1.0, %v2394_v11 }
 0x75d   : > { %v1246_v63 = vmul.f32 0.3275911, %v1245_v62  ;;  %v1259_v2 = vsub.f32 0.0, %v1245_v62 }
 0x75f   : > { %v1247_v1 = vadd.f32 1.0, %v1246_v63  ;;  %v1260_v5 = vmul.f32 %v1259_v2, %v1245_v62 }
 0x761   : > { %2296 = vrcp.f32 %v1247_v1  ;;  %v1261_v12 = vmul.f32 1.442695, %v1260_v5 }
 0x763   : > { %2298 = vpow2.f32 %v1261_v12 }
 0x76b   : > { %v2297_v4 = vpop.eup %2296 }
 0x76c   : > { %v1250_v9 = vmul.f32 1.0614054, %v2297_v4 }
 0x76d   : > { %v2299_v3 = vpop.eup %2298 }
 0x76e   : > { %v1251_v10 = vadd.f32 -1.4531521, %v1250_v9 }
 0x770   : > { %v1252_v14 = vmul.f32 %v2297_v4, %v1251_v10 }
 0x772   : > { %v1253_v15 = vadd.f32 1.4214138, %v1252_v14 }
 0x774   : > { %v1254_v16 = vmul.f32 %v2297_v4, %v1253_v15 }
 0x776   : > { %v1255_v17 = vadd.f32 -0.28449672, %v1254_v16 }
 0x778   : > { %v1256_v18 = vmul.f32 %v2297_v4, %v1255_v17 }
 0x77a   : > { %v1257_v20 = vadd.f32 0.2548296, %v1256_v18 }
 0x77c   : > { %v1258_v21 = vmul.f32 %v2297_v4, %v1257_v20 }
 0x77e   : > { %v1263_v22 = vmul.f32 %v2299_v3, %v1258_v21 }
 0x780   : > { %v1264_v23 = vsub.f32 1.0, %v1263_v22 }
 0x782   : > { %v1265_v26 = vmul.f32 %v1264_v23, %v1244_v24  ;;  %v1397_v23 = vld [vmem:[%s3067_s10] sm:$0xff] }
 0x784   : > { %v1266_v28 = vadd.f32 1.0, %v1265_v26 }
 0x786   : > { %v1267_v29 = vmul.f32 %v1266_v28, %v1241_v27 }
 0x788   : > { %1272 = vrot.lane.b32.xlu1 %v1267_v29, %s3152_s29  ;;  %1269 = vrot.lane.b32.xlu0 %v1267_v29, %s3151_s19  ;;  %v1334_v30 = vmul.f32 %v2646_v0, %v1267_v29 }
 0x78a   : > { %v1335_v32 = vsel %vm688_vm2, %v1334_v30, 0.0  ;;  %v1481_v30 = vld [vmem:[%s3069_s12] sm:$0xff] }
 0x78b   : > { %1336 = vst.msk [vmem:[#allocation2 + $0x20] sm:$0xff] %vm690_vm3, %v1335_v32  ;;  %v1480_v32 = vld [vmem:[%s3068_s11] sm:$0xff] }
 0x78c   : > { %1287 = vrot.lane.b32.xlu1 %v1267_v29, %s3156_s17  ;;  %1284 = vrot.lane.b32.xlu0 %v1267_v29, %s3154_s24 }
 0x790   : > { %1302 = vrot.lane.b32.xlu1 %v1267_v29, %s3159_s23  ;;  %1299 = vrot.lane.b32.xlu0 %v1267_v29, %s3158_s20 }
 0x794   : > { %1317 = vrot.lane.b32.xlu1 %v1267_v29, %s3160_s2  ;;  %1314 = vrot.lane.b32.xlu0 %v1267_v29, %s3150_s26 }
 0x798   : > { %1340 = vrot.lane.b32.xlu1 %v1267_v29, %s3161_s4  ;;  %1337 = vrot.lane.b32.xlu0 %v1267_v29, %s3146_s30 }
 0x79c   : > { %1355 = vrot.lane.b32.xlu1 %v1267_v29, %s3162_s5  ;;  %1352 = vrot.lane.b32.xlu0 %v1267_v29, %s3153_s21 }
 0x7a0   : > { %1370 = vrot.lane.b32.xlu1 %v1267_v29, %s3163_s6  ;;  %1367 = vrot.lane.b32.xlu0 %v1267_v29, %s3155_s28 }
 0x7a4   : > { %1385 = vrot.lane.b32.xlu1 %v1267_v29, %s3164_s16  ;;  %1382 = vrot.lane.b32.xlu0 %v1267_v29, %s3157_s27 }
 0x7fa   : > { %v1273_v0 = vpop.permute.xlu1 %1272  ;;  %v1270_v33 = vpop.permute.xlu0 %1269 }
 0x7fb   : > { %v1275_v34 = vsel %vm680_vm5, %v1270_v33, %v1273_v0 }
 0x7fc   : > { %v1281_v35 = vmul.f32 %v2695_v8, %v1275_v34 }
 0x7fe   : > { %v1282_v36 = vsel %vm688_vm2, %v1281_v35, 0.0  ;;  %v1288_v37 = vpop.permute.xlu1 %1287  ;;  %v1285_v38 = vpop.permute.xlu0 %1284 }
 0x7ff   : > { %1283 = vst.msk [vmem:[#allocation2] sm:$0xff] %vm690_vm3, %v1282_v36  ;;  %v1290_v39 = vsel %vm698_vm6, %v1285_v38, %v1288_v37 }
 0x800   : > { %v1296_v41 = vmul.f32 %v2702_v13, %v1290_v39 }
 0x802   : > { %v1297_v42 = vsel %vm688_vm2, %v1296_v41, 0.0  ;;  %v1303_v43 = vpop.permute.xlu1 %1302  ;;  %v1300_v44 = vpop.permute.xlu0 %1299 }
 0x803   : > { %1298 = vst.msk [vmem:[#allocation2 + $0x8] sm:$0xff] %vm690_vm3, %v1297_v42  ;;  %v1305_v45 = vsel %vm714_vm7, %v1300_v44, %v1303_v43 }
 0x804   : > { %v1311_v8 = vmul.f32 %v2711_v19, %v1305_v45 }
 0x806   : > { %v1312_v47 = vsel %vm688_vm2, %v1311_v8, 0.0  ;;  %v1318_v48 = vpop.permute.xlu1 %1317  ;;  %v1315_v49 = vpop.permute.xlu0 %1314  ;;  %v1398_v54 = vld [vmem:[#allocation2] sm:$0xff] }
 0x807   : > { %1313 = vst.msk [vmem:[#allocation2 + $0x10] sm:$0xff] %vm690_vm3, %v1312_v47  ;;  %v1320_v50 = vsel %vm730_vm8, %v1315_v49, %v1318_v48 }
 0x808   : > { %v1326_v13 = vmul.f32 %v2720_v25, %v1320_v50 }
 0x80a   : > { %v1327_v51 = vsel %vm688_vm2, %v1326_v13, 0.0  ;;  %v1341_v52 = vpop.permute.xlu1 %1340  ;;  %v1338_v53 = vpop.permute.xlu0 %1337  ;;  %v1399_v56 = vld [vmem:[#allocation2 + $0x8] sm:$0xff] }
 0x80b   : > { %1328 = vst.msk [vmem:[#allocation2 + $0x18] sm:$0xff] %vm690_vm3, %v1327_v51  ;;  %v1343_v19 = vsel %vm754_vm9, %v1338_v53, %v1341_v52  ;;  %v2176_v57 = vpack.c.bf16 %v1399_v56, %v1398_v54 }
 0x80c   : > { %v1349_v58 = vmul.f32 %v2729_v31, %v1343_v19 }
 0x80d   : > { %2177 = vmatpush3.bf16.msra.mxu0 %v2176_v57 }
 0x80e   : > { %v1350_v59 = vsel %vm688_vm2, %v1349_v58, 0.0  ;;  %v1356_v60 = vpop.permute.xlu1 %1355  ;;  %v1353_v61 = vpop.permute.xlu0 %1352  ;;  %2178 = vmatprep.subr.bf16.mxu0 %v2378_v6  ;;  %v1400_v4 = vld [vmem:[#allocation2 + $0x10] sm:$0xff] }
 0x80f   : > { %1351 = vst.msk [vmem:[#allocation2 + $0x28] sm:$0xff] %vm690_vm3, %v1350_v59  ;;  %v1358_v25 = vsel %vm770_vm10, %v1353_v61, %v1356_v60 }
 0x810   : > { %v1364_v62 = vmul.f32 %v2738_v40, %v1358_v25  ;;  %v1402_v40 = vld [vmem:[#allocation2 + $0x20] sm:$0xff] }
 0x812   : > { %v1365_v63 = vsel %vm688_vm2, %v1364_v62, 0.0  ;;  %v1371_v1 = vpop.permute.xlu1 %1370  ;;  %v1368_v2 = vpop.permute.xlu0 %1367  ;;  %v1401_v5 = vld [vmem:[#allocation2 + $0x18] sm:$0xff] }
 0x813   : > { %1366 = vst.msk [vmem:[#allocation2 + $0x30] sm:$0xff] %vm690_vm3, %v1365_v63  ;;  %v1373_v31 = vsel %vm786_vm11, %v1368_v2, %v1371_v1  ;;  %v2179_v9 = vpack.c.bf16 %v1401_v5, %v1400_v4 }
 0x814   : > { %v1379_v10 = vmul.f32 %v2748_v46, %v1373_v31 }
 0x815   : > { %2180 = vmatpush3.bf16.msra.mxu0 %v2179_v9 }
 0x816   : > { %v1380_v12 = vsel %vm688_vm2, %v1379_v10, 0.0  ;;  %v1386_v14 = vpop.permute.xlu1 %1385  ;;  %v1383_v15 = vpop.permute.xlu0 %1382  ;;  %2181 = vmatprep.subr.bf16.mxu0 %v2378_v6  ;;  %v1403_v16 = vld [vmem:[#allocation2 + $0x28] sm:$0xff] }
 0x817   : > { %1381 = vst.msk [vmem:[#allocation2 + $0x38] sm:$0xff] %vm690_vm3, %v1380_v12  ;;  %v1388_v17 = vsel %vm802_vm12, %v1383_v15, %v1386_v14  ;;  %v2182_v18 = vpack.c.bf16 %v1403_v16, %v1402_v40 }
 0x818   : > { %v1394_v20 = vmul.f32 %v2757_v55, %v1388_v17 }
 0x819   : > { %2183 = vmatpush3.bf16.msra.mxu0 %v2182_v18 }
 0x81a   : > { %v1395_v21 = vsel %vm688_vm2, %v1394_v20, 0.0  ;;  %2184 = vmatprep.subr.bf16.mxu0 %v2378_v6  ;;  %v1404_v46 = vld [vmem:[#allocation2 + $0x30] sm:$0xff] }
 0x81b   : > { %1396 = vst.msk [vmem:[#allocation2 + $0x40] sm:$0xff] %vm690_vm3, %v1395_v21  ;;  %v1949_v21 = vld [vmem:[%s3060_s3 + $0x4] ss:$0 sm:$0xff] }
 0x81e   : > { %v1405_v3 = vld [vmem:[#allocation2 + $0x38] sm:$0xff] }
 0x81f   : > { %v2185_v22 = vpack.c.bf16 %v1405_v3, %v1404_v46 }
 0x821   : > { %2186 = vmatpush3.bf16.msra.mxu0 %v2185_v22 }
 0x822   : > { %2093 = vmatprep.subr.mxu0 %v2391_v7  ;;  %v1406_v24 = vld [vmem:[#allocation2 + $0x40] sm:$0xff] }
 0x825   : > { %2094 = vmatpush3.msra.mxu0 %v1406_v24 }
 0x826   : > { %2096 = vmatmul.mubr.msk.f32.vlgmr.msra.gmra.mrb[2].mxu0 %vm822_vm13, %v1397_v23 }
 0x8f9   : > { %v1476_v55 = vpop.f32.mrb[2].mxu0 }
 0x8fa   : > { %v2097_v26 = vpop.f32.mrb[3].mxu0  ;;  %v1482_v27 = vsel %vm690_vm3, %v1476_v55, 0.0  ;;  %v1492_v28 = vmul.f32 %v1476_v55, %v1476_v55 }
 0x8fb   : > { %1483 = vadd.xlane.f32.xlu0 %v1482_v27  ;;  %v1946_v26 = vld [vmem:[%s3060_s3 + $0x1] ss:$0 sm:$0xff] }
 0x8fc   : > { %v1493_v29 = vsel %vm690_vm3, %v1492_v28, 0.0 }
 0x8fd   : > { %1494 = vadd.xlane.f32.xlu1 %v1493_v29 }
 0x90e   : > { %1528 = vperm.xlu1 %2286, %v1481_v30  }
 0x911   : > { %1522 = vperm.xlu0 %2285, %v1480_v32   ;;  %v1947_v32 = vld [vmem:[%s3060_s3 + $0x2] ss:$0 sm:$0xff] }
 0x988   : > { %v1484_v0 = vpop.xlane.xlu0 %1483 }
 0x989   : > { %v1485_v33 = vrot.slane %v1484_v0, 4 }
 0x98a   : > { %v1495_v34 = vpop.xlane.xlu1 %1494 }
 0x98b   : > { %v1486_v35 = vadd.f32 %v1485_v33, %v1484_v0  ;;  %v1496_v36 = vrot.slane %v1495_v34, 4 }
 0x98d   : > { %v1487_v37 = vrot.slane %v1486_v35, 2  ;;  %v1497_v38 = vadd.f32 %v1496_v36, %v1495_v34  ;;  %v1948_v36 = vld [vmem:[%s3060_s3 + $0x3] ss:$0 sm:$0xff] }
 0x98e   : > { %v1529_v54 = vpop.permute.xlu1 %1528 }
 0x98f   : > { %v1498_v39 = vrot.slane %v1497_v38, 2  ;;  %v1488_v41 = vadd.f32 %v1487_v37, %v1486_v35 }
 0x990   : > { %v1523_v52 = vpop.permute.xlu0 %1522 }
 0x991   : > { %v1489_v42 = vrot.slane %v1488_v41, 1  ;;  %v1499_v43 = vadd.f32 %v1498_v39, %v1497_v38 }
 0x993   : > { %v1490_v44 = vadd.f32 %v1489_v42, %v1488_v41  ;;  %v1500_v45 = vrot.slane %v1499_v43, 1  ;;  %v1950_v42 = vld [vmem:[%s3060_s3 + $0x5] ss:$0 sm:$0xff] }
 0x995   : > { %2211 = vpush %v1490_v44  ;;  %v1501_v8 = vadd.f32 %v1500_v45, %v1499_v43 }
 0x997   : > { %2213 = vpush %v1501_v8 }
 0x9c6   : > { %s2212_s7 = spop %2211 }
 0x9c7   : > { %s1505_s22 = smul.f32 0.001953125, %s2212_s7 }
 0x9c8   : > { %s2214_s0 = spop %2213 }
 0x9c9   : > { %s1509_s8 = smul.f32 %s1505_s22, %s1505_s22  ;;  %v1512_v47 = vstv %s1505_s22  ;;  %s3171_s22 = sld [smem:[#allocation25_spill]] }
 0x9ca   : > { %s1508_s9 = smul.f32 0.001953125, %s2214_s0  ;;  %v1513_v48 = vsub.f32 %v1476_v55, %v1512_v47 }
 0x9cc   : > { %s1510_s13 = ssub.f32 %s1508_s9, %s1509_s8  ;;  %s3169_s9 = sld [smem:[#allocation24_spill]] }
 0x9ce   : > { %s1511_s14 = smax.f32 %s3168_s1, %s1510_s13 }
 0x9cf   : > { %s1514_s15 = sadd.f32 1e-05, %s1511_s14 }
 0x9d1   : > { %v1515_v49 = vstv %s1514_s15  ;;  %s3170_s15 = sld [smem:[#allocation26_spill]] }
 0x9d2   : > { %2300 = vrsqrt.f32 %v1515_v49 }
 0x9dc   : > { %v2301_v50 = vpop.eup %2300 }
 0x9dd   : > { %2215 = vpush %v2301_v50  ;;  %v1951_v50 = vld [vmem:[%s3060_s3 + $0x6] ss:$0 sm:$0xff] }
 0xa0e   : > { %s2216_s25 = spop %2215 }
 0xa0f   : > { %v1518_v13 = vstv %s2216_s25  ;;  %s3177_s25 = sld [smem:[#allocation27_spill]] }
 0xa10   : > { %v1519_v51 = vmul.f32 %v1518_v13, %v1513_v48 }
 0xa12   : > { %v1525_v53 = vmul.f32 %v1523_v52, %v1519_v51 }
 0xa14   : > { %v1531_v56 = vadd.f32 %v1529_v54, %v1525_v53  ;;  %v1952_v54 = vld [vmem:[%s3060_s3 + $0x7] ss:$0 sm:$0xff] }
 0xa16   : > { %v1533_v19 = vmul.f32 0.70710677, %v1531_v56  ;;  %v1532_v18 = vmul.f32 0.5, %v1531_v56 }
 0xa18   : > { %v1536_v57 = vand.u32 2147483647, %v1533_v19  ;;  %vm1534_vm1 = vcmp.lt.f32.partialorder %v1533_v19, 0.0 }
 0xa19   : > { %v1535_v16 = vsel %vm1534_vm1, -1.0, %v2394_v11  ;;  %v1945_v11 = vld [vmem:[%s3060_s3] ss:$0 sm:$0xff] }
 0xa1a   : > { %v1537_v58 = vmul.f32 0.3275911, %v1536_v57  ;;  %v1550_v60 = vsub.f32 0.0, %v1536_v57 }
 0xa1c   : > { %v1538_v59 = vadd.f32 1.0, %v1537_v58  ;;  %v1551_v25 = vmul.f32 %v1550_v60, %v1536_v57 }
 0xa1e   : > { %2302 = vrcp.f32 %v1538_v59  ;;  %v1552_v1 = vmul.f32 1.442695, %v1551_v25  ;;  %v1953_v25 = vld [vmem:[%s3060_s3 + $0x8] ss:$0 sm:$0xff] }
 0xa20   : > { %2304 = vpow2.f32 %v1552_v1 }
 0xa28   : > { %v2303_v61 = vpop.eup %2302 }
 0xa29   : > { %v1541_v62 = vmul.f32 1.0614054, %v2303_v61 }
 0xa2a   : > { %v2305_v14 = vpop.eup %2304 }
 0xa2b   : > { %v1542_v63 = vadd.f32 -1.4531521, %v1541_v62 }
 0xa2d   : > { %v1543_v2 = vmul.f32 %v2303_v61, %v1542_v63 }
 0xa2f   : > { %v1544_v4 = vadd.f32 1.4214138, %v1543_v2 }
 0xa31   : > { %v1545_v5 = vmul.f32 %v2303_v61, %v1544_v4 }
 0xa33   : > { %v1546_v31 = vadd.f32 -0.28449672, %v1545_v5 }
 0xa35   : > { %v1547_v9 = vmul.f32 %v2303_v61, %v1546_v31 }
 0xa37   : > { %v1548_v10 = vadd.f32 0.2548296, %v1547_v9 }
 0xa39   : > { %v1549_v12 = vmul.f32 %v2303_v61, %v1548_v10 }
 0xa3b   : > { %v1554_v15 = vmul.f32 %v2305_v14, %v1549_v12  ;;  %v1679_v14 = vld [vmem:[%s3169_s9] sm:$0xff] }
 0xa3d   : > { %v1555_v40 = vsub.f32 1.0, %v1554_v15 }
 0xa3f   : > { %v1556_v17 = vmul.f32 %v1555_v40, %v1535_v16 }
 0xa41   : > { %v1557_v20 = vadd.f32 1.0, %v1556_v17 }
 0xa43   : > { %v1558_v46 = vmul.f32 %v1557_v20, %v1532_v18  ;;  %v1762_v20 = vld [vmem:[%s3171_s22] sm:$0xff] }
 0xa45   : > { %1563 = vrot.lane.b32.xlu1 %v1558_v46, %s3152_s29  ;;  %1560 = vrot.lane.b32.xlu0 %v1558_v46, %s3151_s19  ;;  %v1621_v3 = vmul.f32 %v1949_v21, %v1558_v46 }
 0xa47   : > { %1622 = vst.msk [vmem:[#allocation2 + $0x20] sm:$0xff] %vm690_vm3, %v1621_v3 }
 0xa49   : > { %1577 = vrot.lane.b32.xlu1 %v1558_v46, %s3156_s17  ;;  %1574 = vrot.lane.b32.xlu0 %v1558_v46, %s3154_s24 }
 0xa4d   : > { %1591 = vrot.lane.b32.xlu1 %v1558_v46, %s3159_s23  ;;  %1588 = vrot.lane.b32.xlu0 %v1558_v46, %s3158_s20  ;;  %s3172_s23 = sshll.u32 %s2531_s18, 3  ;;  %s3174_s18 = sld [smem:[#allocation7_spill]] }
 0xa4e   : > { %v1684_v62 = vld [vmem:[#allocation2 + $0x20] sm:$0xff] }
 0xa51   : > { %1605 = vrot.lane.b32.xlu1 %v1558_v46, %s3160_s2  ;;  %1602 = vrot.lane.b32.xlu0 %v1558_v46, %s3150_s26  ;;  %s2395_s2 = smov [#allocation3]  }
 0xa55   : > { %1626 = vrot.lane.b32.xlu1 %v1558_v46, %s3161_s4  ;;  %1623 = vrot.lane.b32.xlu0 %v1558_v46, %s3146_s30  ;;  %s2312_s4 = sshll.u32 %s2395_s2, 4  ;;  %s2313_s4 = int_to_ptr.vmem [resolvable:$false] %s2312_s4 }
 0xa59   : > { %1640 = vrot.lane.b32.xlu1 %v1558_v46, %s3162_s5  ;;  %1637 = vrot.lane.b32.xlu0 %v1558_v46, %s3153_s21  ;;  %s3173_s5 = sld [smem:[#allocation16_spill]]  ;;  %s3175_s21 = sld [smem:[#allocation10_spill]] }
 0xa5d   : > { %1654 = vrot.lane.b32.xlu1 %v1558_v46, %s3163_s6  ;;  %1651 = vrot.lane.b32.xlu0 %v1558_v46, %s3155_s28 }
 0xa5f   : > { %s536_s6 = scalar_lea.vmem %s3173_s5, %s3172_s23  ;;  %s1956_s9 = sshll.u32 %s3175_s21, 7 }
 0xa60   : > { %v1814_v21 = vld [vmem:[%s536_s6] sm:$0xff]  ;;  %s3014_s7 = scalar_lea.hbm %s3177_s25, %s1956_s9  ;;  %s2314_s5 = scalar_lea.vmem %s2313_s4, 256 }
 0xa61   : > { %1668 = vrot.lane.b32.xlu1 %v1558_v46, %s3164_s16  ;;  %1665 = vrot.lane.b32.xlu0 %v1558_v46, %s3157_s27  ;;  %s525_s27 = sand.u32 1, %s3174_s18  }
 0xa62   : > { %s1911_s20 = sshll.u32 %s525_s27, 3  ;;  %s1823_s22 = scalar_lea.sflag [#allocation4], %s525_s27 }
 0xa63   : > { %s527_s13 = scalar_lea.vmem [#allocation3], %s1911_s20 }
 0xa64   : > { %s1836_s14 = sshll.u32 %s527_s13, 4  ;;  %s3016_s14 = int_to_ptr.vmem [resolvable:$true] %s1836_s14 }
 0xa65   : > { %s2308_s23 = scalar_lea.vmem %s3016_s14, 128  ;;  %p2315_p0 = scmp.lt.s32.totalorder %s3016_s14, %s2313_s4 }
 0xa66   : > { %p2309_p11 = scmp.ne.s32.totalorder %s3016_s14, %s2308_s23  ;;  %p2316_p1 = scmp.lt.s32.totalorder %s2314_s5, %s2308_s23 }
 0xa68   : > { %p2310_p12 = pnand %p2309_p11, %p2519_p5  ;;  %p2317_p2 = por %p2316_p1, %p2315_p0 }
 0xa6a   : > { %p2311_p13 = pneg %p2310_p12 }
 0xa6c   : > { %p2318_p3 = pnand %p2317_p2, %p2311_p13 }
 0xab7   : > { %v1564_v22 = vpop.permute.xlu1 %1563  ;;  %v1561_v23 = vpop.permute.xlu0 %1560 }
 0xab8   : > { %v1566_v24 = vsel %vm680_vm5, %v1561_v23, %v1564_v22 }
 0xab9   : > { %v1572_v55 = vmul.f32 %v1945_v11, %v1566_v24 }
 0xabb   : > { %1573 = vst.msk [vmem:[#allocation2] sm:$0xff] %vm690_vm3, %v1572_v55  ;;  %v1578_v27 = vpop.permute.xlu1 %1577  ;;  %v1575_v28 = vpop.permute.xlu0 %1574 }
 0xabc   : > { %v1580_v29 = vsel %vm698_vm6, %v1575_v28, %v1578_v27 }
 0xabd   : > { %v1586_v30 = vmul.f32 %v1946_v26, %v1580_v29 }
 0xabf   : > { %1587 = vst.msk [vmem:[#allocation2 + $0x8] sm:$0xff] %vm690_vm3, %v1586_v30  ;;  %v1592_v0 = vpop.permute.xlu1 %1591  ;;  %v1589_v33 = vpop.permute.xlu0 %1588 }
 0xac0   : > { %v1594_v34 = vsel %vm714_vm7, %v1589_v33, %v1592_v0 }
 0xac1   : > { %v1600_v35 = vmul.f32 %v1947_v32, %v1594_v34 }
 0xac2   : > { %v1680_v43 = vld [vmem:[#allocation2] sm:$0xff] }
 0xac3   : > { %1601 = vst.msk [vmem:[#allocation2 + $0x10] sm:$0xff] %vm690_vm3, %v1600_v35  ;;  %v1606_v37 = vpop.permute.xlu1 %1605  ;;  %v1603_v38 = vpop.permute.xlu0 %1602 }
 0xac4   : > { %v1608_v39 = vsel %vm730_vm8, %v1603_v38, %v1606_v37 }
 0xac5   : > { %v1614_v41 = vmul.f32 %v1948_v36, %v1608_v39 }
 0xac6   : > { %v1681_v44 = vld [vmem:[#allocation2 + $0x8] sm:$0xff] }
 0xac7   : > { %1615 = vst.msk [vmem:[#allocation2 + $0x18] sm:$0xff] %vm690_vm3, %v1614_v41  ;;  %v1627_v45 = vpop.permute.xlu1 %1626  ;;  %v1624_v8 = vpop.permute.xlu0 %1623  ;;  %v2188_v47 = vpack.c.bf16 %v1681_v44, %v1680_v43 }
 0xac8   : > { %v1629_v48 = vsel %vm754_vm9, %v1624_v8, %v1627_v45 }
 0xac9   : > { %v1635_v49 = vmul.f32 %v1950_v42, %v1629_v48  ;;  %2189 = vmatpush3.bf16.msra.mxu1 %v2188_v47 }
 0xaca   : > { %2190 = vmatprep.subr.bf16.mxu1 %v2378_v6  ;;  %v1682_v56 = vld [vmem:[#allocation2 + $0x10] sm:$0xff] }
 0xacb   : > { %1636 = vst.msk [vmem:[#allocation2 + $0x28] sm:$0xff] %vm690_vm3, %v1635_v49  ;;  %v1641_v13 = vpop.permute.xlu1 %1640  ;;  %v1638_v51 = vpop.permute.xlu0 %1637 }
 0xacc   : > { %v1643_v52 = vsel %vm770_vm10, %v1638_v51, %v1641_v13 }
 0xacd   : > { %v1649_v53 = vmul.f32 %v1951_v50, %v1643_v52 }
 0xace   : > { %v1683_v19 = vld [vmem:[#allocation2 + $0x18] sm:$0xff] }
 0xacf   : > { %1650 = vst.msk [vmem:[#allocation2 + $0x30] sm:$0xff] %vm690_vm3, %v1649_v53  ;;  %v1655_v57 = vpop.permute.xlu1 %1654  ;;  %v1652_v58 = vpop.permute.xlu0 %1651  ;;  %v2191_v59 = vpack.c.bf16 %v1683_v19, %v1682_v56 }
 0xad0   : > { %v1657_v60 = vsel %vm786_vm11, %v1652_v58, %v1655_v57 }
 0xad1   : > { %v1663_v61 = vmul.f32 %v1952_v54, %v1657_v60  ;;  %2192 = vmatpush3.bf16.msra.mxu1 %v2191_v59 }
 0xad2   : > { %2193 = vmatprep.subr.bf16.mxu1 %v2378_v6  ;;  %v1685_v63 = vld [vmem:[#allocation2 + $0x28] sm:$0xff] }
 0xad3   : > { %1664 = vst.msk [vmem:[#allocation2 + $0x38] sm:$0xff] %vm690_vm3, %v1663_v61  ;;  %v1669_v1 = vpop.permute.xlu1 %1668  ;;  %v1666_v2 = vpop.permute.xlu0 %1665  ;;  %v2194_v4 = vpack.c.bf16 %v1685_v63, %v1684_v62 }
 0xad4   : > { %v1671_v5 = vsel %vm802_vm12, %v1666_v2, %v1669_v1 }
 0xad5   : > { %v1677_v31 = vmul.f32 %v1953_v25, %v1671_v5  ;;  %2195 = vmatpush3.bf16.msra.mxu1 %v2194_v4 }
 0xad6   : > { %2196 = vmatprep.subr.bf16.mxu1 %v2378_v6  ;;  %v1686_v9 = vld [vmem:[#allocation2 + $0x30] sm:$0xff] }
 0xad7   : > { %1678 = vst.msk [vmem:[#allocation2 + $0x40] sm:$0xff] %vm690_vm3, %v1677_v31 }
 0xada   : > { %v1687_v10 = vld [vmem:[#allocation2 + $0x38] sm:$0xff] }
 0xadb   : > { %v2197_v12 = vpack.c.bf16 %v1687_v10, %v1686_v9 }
 0xadd   : > { %2198 = vmatpush3.bf16.msra.mxu1 %v2197_v12 }
 0xade   : > { %2114 = vmatprep.subr.mxu1 %v2391_v7  ;;  %v1688_v15 = vld [vmem:[#allocation2 + $0x40] sm:$0xff] }
 0xadf   : > { %v1763_v7 = vld [vmem:[%s3170_s15] sm:$0xff] }
 0xae1   : > { %2115 = vmatpush3.msra.mxu1 %v1688_v15 }
 0xae2   : > { %2117 = vmatmul.mubr.msk.f32.vlgmr.msra.gmra.mrb[4].mxu1 %vm822_vm13, %v1679_v14 }
 0xbb5   : > { %v1758_v40 = vpop.f32.mrb[4].mxu1 }
 0xbb6   : > { %v2118_v16 = vpop.f32.mrb[5].mxu1  ;;  %v1764_v6 = vsel %vm690_vm3, %v1758_v40, 0.0  ;;  %v1774_v17 = vmul.f32 %v1758_v40, %v1758_v40 }
 0xbb7   : > { %1765 = vadd.xlane.f32.xlu0 %v1764_v6 }
 0xbb8   : > { %v1775_v18 = vsel %vm690_vm3, %v1774_v17, 0.0 }
 0xbb9   : > { %1776 = vadd.xlane.f32.xlu1 %v1775_v18 }
 0xbca   : > { %1810 = vperm.xlu1 %2286, %v1763_v7  }
 0xbcd   : > { %1804 = vperm.xlu0 %2285, %v1762_v20  }
 0xbd1   : > { %1817 = vperm.xlu0 %2285, %v1814_v21  }
 0xc44   : > { %v1766_v46 = vpop.xlane.xlu0 %1765 }
 0xc45   : > { %v1767_v3 = vrot.slane %v1766_v46, 4 }
 0xc46   : > { %v1777_v11 = vpop.xlane.xlu1 %1776 }
 0xc47   : > { %v1768_v22 = vadd.f32 %v1767_v3, %v1766_v46  ;;  %v1778_v23 = vrot.slane %v1777_v11, 4 }
 0xc49   : > { %v1769_v24 = vrot.slane %v1768_v22, 2  ;;  %v1779_v55 = vadd.f32 %v1778_v23, %v1777_v11 }
 0xc4a   : > { %v1811_v42 = vpop.permute.xlu1 %1810 }
 0xc4b   : > { %v1780_v26 = vrot.slane %v1779_v55, 2  ;;  %v1770_v27 = vadd.f32 %v1769_v24, %v1768_v22 }
 0xc4c   : > { %v1805_v37 = vpop.permute.xlu0 %1804 }
 0xc4d   : > { %v1771_v28 = vrot.slane %v1770_v27, 1  ;;  %v1781_v29 = vadd.f32 %v1780_v26, %v1779_v55 }
 0xc4f   : > { %v1772_v30 = vadd.f32 %v1771_v28, %v1770_v27  ;;  %v1782_v32 = vrot.slane %v1781_v29, 1 }
 0xc50   : > { %v1818_v44 = vpop.permute.xlu0 %1817 }
 0xc51   : > { %2217 = vpush %v1772_v30  ;;  %v1783_v0 = vadd.f32 %v1782_v32, %v1781_v29 }
 0xc53   : > { %2219 = vpush %v1783_v0 }
 0xc82   : > { %s2218_s16 = spop %2217 }
 0xc83   : > { %s1787_s30 = smul.f32 0.001953125, %s2218_s16 }
 0xc84   : > { %s2220_s26 = spop %2219 }
 0xc85   : > { %s1791_s19 = smul.f32 %s1787_s30, %s1787_s30  ;;  %v1794_v33 = vstv %s1787_s30 }
 0xc86   : > { %s1790_s29 = smul.f32 0.001953125, %s2220_s26  ;;  %v1795_v34 = vsub.f32 %v1758_v40, %v1794_v33 }
 0xc88   : > { %s1792_s24 = ssub.f32 %s1790_s29, %s1791_s19 }
 0xc8a   : > { %s1793_s28 = smax.f32 %s3168_s1, %s1792_s24 }
 0xc8b   : > { %s1796_s17 = sadd.f32 1e-05, %s1793_s28 }
 0xc8d   : > { %v1797_v35 = vstv %s1796_s17 }
 0xc8e   : > { %2306 = vrsqrt.f32 %v1797_v35 }
 0xc98   : > { %v2307_v36 = vpop.eup %2306 }
 0xc99   : > { %2221 = vpush %v2307_v36 }
 0xcca   : > { %s2222_s0 = spop %2221 }
 0xccb   : > { %v1800_v38 = vstv %s2222_s0 }
 0xccc   : > { %v1801_v39 = vmul.f32 %v1800_v38, %v1795_v34 }
 0xcce   : > { %v1807_v41 = vmul.f32 %v1805_v37, %v1801_v39 }
 0xcd0   : > { %v1813_v43 = vadd.f32 %v1811_v42, %v1807_v41 }
 0xcd2   : > { %v1820_v45 = vadd.f32 %v1818_v44, %v1813_v43 }
 0xcd4   : > { %1821 = vst.msk [vmem:[%s527_s13] sm:$0xff] %vm690_vm3, %v1820_v45 }
 0xcd5   : > { %2321 = shalt.err (!%p2318_p3)
}
 0xcd6   : > { %s2322_s6 = scalar_lea.hbm %s3014_s7, 128  ;;  %s2326_s30 = scalar_lea.hbm %s3177_s25, 256 }
 0xcd7   : > { %p2323_p4 = scmp.ne.s32.totalorder %s3014_s7, %s2322_s6  ;;  %p2327_p9 = scmp.lt.u32.totalorder %s3014_s7, %s3177_s25 }
 0xcd8   : > { %p2328_p10 = scmp.lt.u32.totalorder %s2326_s30, %s2322_s6  ;;  %p2330_p12 = scmp.lt.u32.totalorder %s2322_s6, %s3014_s7 }
 0xcd9   : > { %p2324_p7 = pnand %p2323_p4, %p2519_p5 }
 0xcda   : > { %p2329_p11 = por %p2328_p10, %p2327_p9 }
 0xcdb   : > { %p2325_p8 = pneg %p2324_p7 }
 0xcdc   : > { %p2331_p13 = por %p2330_p12, %p2329_p11 }
 0xcde   : > { %p2332_p0 = pnand %p2331_p13, %p2325_p8 }
 0xce0   : > { %2335 = shalt.err (!%p2332_p0)
}
 0xce1   : > { %2223 = dma.vmem_to_hbm [thread:$0]  (%p2519_p5), %s3016_s14, 128, %s3014_s7, %s1823_s22  }
 0xce2 PF: > { %s3178_s29 = sld [smem:[#allocation9_spill]]  ;;  %s3179_s21 = sld [smem:[#allocation6_spill]] }
 0xce8   : > { %p2229_p1 = scmp.ge.s32.totalorder %s3178_s29, 2  ;;  %s1848_s28 = sand.u32 1, %s3179_s21  }
 0xce9   : > { %s1849_s17 = scalar_lea.sflag [#allocation4], %s1848_s28 }
 0xcea   : > { %p2226_p2 = pnand %p2229_p1, %p2523_p6 }
 0xcec   : > { %2353 = dma.done.wait (!%p2226_p2), %s1849_s17, 128  }
 0xced   : > { %2355 = vsyncadd (!%p2226_p2), %s1849_s17, 4294967168  ;;  %s3181_s24 = sld [smem:[#allocation11_spill]]  ;;  %s3182_s21 = sld [smem:[#allocation7_spill]] }
 0xcee   : > { %s3183_s22 = sld [smem:[#allocation8_spill]]  ;;  %s3184_s23 = sld [smem:[#allocation12_spill]] }
 0xcf3   : > { %p26_p3 = scmp.ge.s32.totalorder %s3181_s24, 4  }
 0xcf5   :  { %28 = sbr.rel (!%p26_p3) target bundleno = 17 (0x11), region = 122 }
 0xcfc   :  { %1854 = vsyncpa [#allocation4], 1 }
 0xcfd   :  { %1856 = vsyncpa [#allocation4 + $0x1], 1 }

</bundles_post_ra>
